<compile_context>
chip_gen: v5e
topology: v5e:2x2
jax: 0.10.0
libtpu: 0.0.40
codegen_flags: <defaults>
</compile_context>

<pallas_src>
import functools

import jax
import jax.numpy as jnp
from jax.experimental import pallas as pl
from jax.experimental.pallas import tpu as pltpu  # noqa: F401  (TPU backend)

PAD = 128  # pad every feature dimension to the 128-lane vreg width


# ------------------------------ Pallas kernel ------------------------------ #

def _fused_gnn_kernel(x_ref, adj_ref, conv_w_ref, conv_b_ref,
                      w1_ref, b1_ref, w2_ref, b2_ref, o_ref):
    """Entire forward pass; single block, everything VMEM resident.

    x_ref      : (N, PAD)          f32   node features, zero-padded lanes
    adj_ref    : (N, N)            bf16  dense adjacency A[dst, src]
    conv_w_ref : (L, 2*PAD, PAD)   f32   per-layer [W_rel; W_root] (zero padded)
    conv_b_ref : (L, 1, PAD)       f32   per-layer bias (zero padded)
    w1/b1/w2/b2: head Linear params, zero padded to 128 lanes
    o_ref      : (N, PAD)          f32   padded logits (cols >= num_trucks = 0)
    """
    adj = adj_ref[...]                                 # loaded once, reused
    h = x_ref[...]
    num_layers = conv_w_ref.shape[0]
    for l in range(num_layers):                        # static unroll
        # Neighbourhood sum via dense MXU matmul: bf16 operands, f32 accumulate.
        agg = jnp.dot(adj, h.astype(jnp.bfloat16),
                      preferred_element_type=jnp.float32)
        # Merged GraphConv matmul: [agg | h] @ [W_rel; W_root] + b, then ReLU.
        cat = jnp.concatenate([agg, h], axis=-1)       # (N, 2*PAD)
        h = jnp.maximum(
            jnp.dot(cat, conv_w_ref[l], preferred_element_type=jnp.float32)
            + conv_b_ref[l],
            0.0)
        # Dropout: inference mode -> identity.
    # Edge classifier head: Linear -> ReLU -> (Dropout id) -> Linear.
    z = jnp.maximum(
        jnp.dot(h, w1_ref[...], preferred_element_type=jnp.float32)
        + b1_ref[...],
        0.0)
    o_ref[...] = (jnp.dot(z, w2_ref[...], preferred_element_type=jnp.float32)
                  + b2_ref[...])


# ------------------------------- Wrappers ----------------------------------- #

def _pad2d(a, shape):
    return jnp.pad(a, [(0, t - s) for s, t in zip(a.shape, shape)])


def build_adjacency(edge_index, n):
    """Dense A[dst, src] += 1 (built once per graph, reused every forward)."""
    a = jnp.zeros((n, n), jnp.float32).at[edge_index[1], edge_index[0]].add(1.0)
    return a.astype(jnp.bfloat16)  # small integer multiplicities: exact in bf16


def pack_params(params):
    """Zero-pad / stack the torch-shaped params once for the fused kernel."""
    conv_ws, conv_bs = [], []
    for conv in params["convs"]:
        w_cat = jnp.concatenate([_pad2d(conv["w_rel"], (PAD, PAD)),
                                 _pad2d(conv["w_root"], (PAD, PAD))], axis=0)
        conv_ws.append(w_cat)                              # (2*PAD, PAD)
        conv_bs.append(_pad2d(conv["b"].reshape(1, -1), (1, PAD)))
    hp = params["head"]
    return dict(
        conv_w=jnp.stack(conv_ws),                         # (L, 2*PAD, PAD)
        conv_b=jnp.stack(conv_bs),                         # (L, 1, PAD)
        w1=_pad2d(hp["w1"], (PAD, PAD)),
        b1=_pad2d(hp["b1"].reshape(1, -1), (1, PAD)),
        w2=_pad2d(hp["w2"], (PAD, PAD)),
        b2=_pad2d(hp["b2"].reshape(1, -1), (1, PAD)),
    )


@functools.partial(jax.jit, static_argnames=("num_trucks",))
def forward(x, adj_bf16, packed, *, num_trucks):
    """x: (N, C_in) f32; adj_bf16: (N, N) bf16; returns (N, num_trucks) f32."""
    n = x.shape[0]
    x_pad = _pad2d(x, (n, PAD))
    logits_pad = pl.pallas_call(
        _fused_gnn_kernel,
        out_shape=jax.ShapeDtypeStruct((n, PAD), jnp.float32),
        # Single whole-array block: adj + activations + all weights total a few
        # hundred KiB here, comfortably VMEM resident on v5e/v6e/v7x.
    )(x_pad, adj_bf16, packed["conv_w"], packed["conv_b"],
      packed["w1"], packed["b1"], packed["w2"], packed["b2"])
    return logits_pad[:, :num_trucks]


# --------------------------- Parameter creation ----------------------------- #

def init_params(key, in_channels, hidden_channels, num_layers, num_trucks):
    """Deterministic synthetic weights (shapes match the torch module)."""
    conv_dims = ([(in_channels, hidden_channels)]
                 + [(hidden_channels, hidden_channels)] * (num_layers - 2)
                 + [(hidden_channels, hidden_channels)])
    convs = []
    for (cin, cout) in conv_dims:
        key, k1, k2, k3 = jax.random.split(key, 4)
        scale = 1.0 / jnp.sqrt(jnp.float32(cin))
        convs.append(dict(
            w_rel=jax.random.uniform(k1, (cin, cout), jnp.float32, -scale, scale),
            w_root=jax.random.uniform(k2, (cin, cout), jnp.float32, -scale, scale),
            b=jax.random.uniform(k3, (cout,), jnp.float32, -scale, scale),
        ))
    key, k1, k2, k3, k4 = jax.random.split(key, 5)
    s1 = 1.0 / jnp.sqrt(jnp.float32(hidden_channels))
    head = dict(
        w1=jax.random.uniform(k1, (hidden_channels, hidden_channels), jnp.float32, -s1, s1),
        b1=jax.random.uniform(k2, (hidden_channels,), jnp.float32, -s1, s1),
        w2=jax.random.uniform(k3, (hidden_channels, num_trucks), jnp.float32, -s1, s1),
        b2=jax.random.uniform(k4, (num_trucks,), jnp.float32, -s1, s1),
    )
    return dict(convs=convs, head=head)


# ---------------------------- Pure-JAX reference ----------------------------- #

def reference_forward(x, adj_bf16, params):
    """Dense reference of the torch module (same bf16 aggregation operands)."""
    h = x
    for conv in params["convs"]:
        agg = jnp.dot(adj_bf16, h.astype(jnp.bfloat16),
                      preferred_element_type=jnp.float32)
        h = jnp.maximum(agg @ conv["w_rel"] + h @ conv["w_root"] + conv["b"], 0.0)
    hp = params["head"]
    z = jnp.maximum(h @ hp["w1"] + hp["b1"], 0.0)
    return z @ hp["w2"] + hp["b2"]


# ---------------------------------- Main ------------------------------------- #

if __name__ == "__main__":
    IN_CHANNELS = 8
    HIDDEN = 32
    NUM_LAYERS = 3
    NUM_TRUCKS = 4
    N_EDGES = 128         # nodes of the line graph (= task edges)
    N_LINE_EDGES = 256    # directed edges of the line graph

    key = jax.random.PRNGKey(0)
    kx, ke, kp = jax.random.split(key, 3)

    x = jax.random.normal(kx, (N_EDGES, IN_CHANNELS), jnp.float32)
    edge_index = jax.random.randint(ke, (2, N_LINE_EDGES), 0, N_EDGES, jnp.int32)
    params = init_params(kp, IN_CHANNELS, HIDDEN, NUM_LAYERS, NUM_TRUCKS)

    packed = pack_params(params)                 # pad/stack weights once
    adj = build_adjacency(edge_index, N_EDGES)   # build dense adjacency once

    logits = forward(x, adj, packed, num_trucks=NUM_TRUCKS)
    logits = jax.block_until_ready(logits)

    ref = reference_forward(x, adj, params)
    assert logits.shape == (N_EDGES, NUM_TRUCKS)
    assert jnp.all(jnp.isfinite(logits))
    assert jnp.allclose(logits, ref, rtol=1e-2, atol=1e-2)
    print("KERNEL_OK")
</pallas_src>

<mosaic_0001>
module attributes {stable_mosaic.version = 11 : i64} {
  func.func @_fused_gnn_kernel(%arg0: memref<128x128xf32, #tpu.memory_space<vmem>>, %arg1: memref<128x128xbf16, #tpu.memory_space<vmem>>, %arg2: memref<3x256x128xf32, #tpu.memory_space<vmem>>, %arg3: memref<3x1x128xf32, #tpu.memory_space<vmem>>, %arg4: memref<128x128xf32, #tpu.memory_space<vmem>>, %arg5: memref<1x128xf32, #tpu.memory_space<vmem>>, %arg6: memref<128x128xf32, #tpu.memory_space<vmem>>, %arg7: memref<1x128xf32, #tpu.memory_space<vmem>>, %arg8: memref<128x128xf32, #tpu.memory_space<vmem>>) attributes {dimension_semantics = [], scalar_prefetch = 0 : i64, scratch_operands = 0 : i64, tpu.core_type = #tpu.core_type<tc>} {
    %c0 = arith.constant 0 : index
    %c0_0 = arith.constant 0 : index
    %0 = vector.load %arg1[%c0, %c0_0] : memref<128x128xbf16, #tpu.memory_space<vmem>>, vector<128x128xbf16>
    %c0_1 = arith.constant 0 : index
    %c0_2 = arith.constant 0 : index
    %1 = vector.load %arg0[%c0_1, %c0_2] : memref<128x128xf32, #tpu.memory_space<vmem>>, vector<128x128xf32>
    %2 = arith.truncf %1 : vector<128x128xf32> to vector<128x128xbf16>
    %cst = arith.constant dense<0.000000e+00> : vector<128x128xf32>
    %3 = tpu.matmul %0, %2, %cst {dimension_numbers = #tpu.dot_dimension_numbers<[1], [0], [0], [1], [0, 0, 1, 1], [], []>} : vector<128x128xbf16>, vector<128x128xbf16>, vector<128x128xf32> -> vector<128x128xf32>
    %4 = tpu.concatenate %3, %1 in 1 : vector<128x128xf32>, vector<128x128xf32> -> vector<128x256xf32>
    %c0_3 = arith.constant 0 : index
    %c0_4 = arith.constant 0 : index
    %c0_5 = arith.constant 0 : index
    %5 = vector.load %arg2[%c0_3, %c0_4, %c0_5] : memref<3x256x128xf32, #tpu.memory_space<vmem>>, vector<1x256x128xf32>
    %6 = vector.shape_cast %5 : vector<1x256x128xf32> to vector<256x128xf32>
    %cst_6 = arith.constant dense<0.000000e+00> : vector<128x128xf32>
    %7 = tpu.matmul %4, %6, %cst_6 {dimension_numbers = #tpu.dot_dimension_numbers<[1], [0], [0], [1], [0, 0, 1, 1], [], []>} : vector<128x256xf32>, vector<256x128xf32>, vector<128x128xf32> -> vector<128x128xf32>
    %c0_7 = arith.constant 0 : index
    %c0_8 = arith.constant 0 : index
    %c0_9 = arith.constant 0 : index
    %8 = vector.load %arg3[%c0_7, %c0_8, %c0_9] : memref<3x1x128xf32, #tpu.memory_space<vmem>>, vector<1x1x128xf32>
    %9 = vector.shape_cast %8 : vector<1x1x128xf32> to vector<1x128xf32>
    %10 = vector.broadcast %9 : vector<1x128xf32> to vector<128x128xf32>
    %11 = arith.addf %7, %10 : vector<128x128xf32>
    %cst_10 = arith.constant 0.000000e+00 : f32
    %12 = vector.broadcast %cst_10 : f32 to vector<128x128xf32>
    %13 = arith.maximumf %11, %12 : vector<128x128xf32>
    %14 = arith.truncf %13 : vector<128x128xf32> to vector<128x128xbf16>
    %cst_11 = arith.constant dense<0.000000e+00> : vector<128x128xf32>
    %15 = tpu.matmul %0, %14, %cst_11 {dimension_numbers = #tpu.dot_dimension_numbers<[1], [0], [0], [1], [0, 0, 1, 1], [], []>} : vector<128x128xbf16>, vector<128x128xbf16>, vector<128x128xf32> -> vector<128x128xf32>
    %16 = tpu.concatenate %15, %13 in 1 : vector<128x128xf32>, vector<128x128xf32> -> vector<128x256xf32>
    %c1 = arith.constant 1 : index
    %c0_12 = arith.constant 0 : index
    %c0_13 = arith.constant 0 : index
    %17 = vector.load %arg2[%c1, %c0_12, %c0_13] : memref<3x256x128xf32, #tpu.memory_space<vmem>>, vector<1x256x128xf32>
    %18 = vector.shape_cast %17 : vector<1x256x128xf32> to vector<256x128xf32>
    %cst_14 = arith.constant dense<0.000000e+00> : vector<128x128xf32>
    %19 = tpu.matmul %16, %18, %cst_14 {dimension_numbers = #tpu.dot_dimension_numbers<[1], [0], [0], [1], [0, 0, 1, 1], [], []>} : vector<128x256xf32>, vector<256x128xf32>, vector<128x128xf32> -> vector<128x128xf32>
    %c1_15 = arith.constant 1 : index
    %c0_16 = arith.constant 0 : index
    %c0_17 = arith.constant 0 : index
    %20 = vector.load %arg3[%c1_15, %c0_16, %c0_17] : memref<3x1x128xf32, #tpu.memory_space<vmem>>, vector<1x1x128xf32>
    %21 = vector.shape_cast %20 : vector<1x1x128xf32> to vector<1x128xf32>
    %22 = vector.broadcast %21 : vector<1x128xf32> to vector<128x128xf32>
    %23 = arith.addf %19, %22 : vector<128x128xf32>
    %cst_18 = arith.constant 0.000000e+00 : f32
    %24 = vector.broadcast %cst_18 : f32 to vector<128x128xf32>
    %25 = arith.maximumf %23, %24 : vector<128x128xf32>
    %26 = arith.truncf %25 : vector<128x128xf32> to vector<128x128xbf16>
    %cst_19 = arith.constant dense<0.000000e+00> : vector<128x128xf32>
    %27 = tpu.matmul %0, %26, %cst_19 {dimension_numbers = #tpu.dot_dimension_numbers<[1], [0], [0], [1], [0, 0, 1, 1], [], []>} : vector<128x128xbf16>, vector<128x128xbf16>, vector<128x128xf32> -> vector<128x128xf32>
    %28 = tpu.concatenate %27, %25 in 1 : vector<128x128xf32>, vector<128x128xf32> -> vector<128x256xf32>
    %c2 = arith.constant 2 : index
    %c0_20 = arith.constant 0 : index
    %c0_21 = arith.constant 0 : index
    %29 = vector.load %arg2[%c2, %c0_20, %c0_21] : memref<3x256x128xf32, #tpu.memory_space<vmem>>, vector<1x256x128xf32>
    %30 = vector.shape_cast %29 : vector<1x256x128xf32> to vector<256x128xf32>
    %cst_22 = arith.constant dense<0.000000e+00> : vector<128x128xf32>
    %31 = tpu.matmul %28, %30, %cst_22 {dimension_numbers = #tpu.dot_dimension_numbers<[1], [0], [0], [1], [0, 0, 1, 1], [], []>} : vector<128x256xf32>, vector<256x128xf32>, vector<128x128xf32> -> vector<128x128xf32>
    %c2_23 = arith.constant 2 : index
    %c0_24 = arith.constant 0 : index
    %c0_25 = arith.constant 0 : index
    %32 = vector.load %arg3[%c2_23, %c0_24, %c0_25] : memref<3x1x128xf32, #tpu.memory_space<vmem>>, vector<1x1x128xf32>
    %33 = vector.shape_cast %32 : vector<1x1x128xf32> to vector<1x128xf32>
    %34 = vector.broadcast %33 : vector<1x128xf32> to vector<128x128xf32>
    %35 = arith.addf %31, %34 : vector<128x128xf32>
    %cst_26 = arith.constant 0.000000e+00 : f32
    %36 = vector.broadcast %cst_26 : f32 to vector<128x128xf32>
    %37 = arith.maximumf %35, %36 : vector<128x128xf32>
    %c0_27 = arith.constant 0 : index
    %c0_28 = arith.constant 0 : index
    %38 = vector.load %arg4[%c0_27, %c0_28] : memref<128x128xf32, #tpu.memory_space<vmem>>, vector<128x128xf32>
    %cst_29 = arith.constant dense<0.000000e+00> : vector<128x128xf32>
    %39 = tpu.matmul %37, %38, %cst_29 {dimension_numbers = #tpu.dot_dimension_numbers<[1], [0], [0], [1], [0, 0, 1, 1], [], []>} : vector<128x128xf32>, vector<128x128xf32>, vector<128x128xf32> -> vector<128x128xf32>
    %c0_30 = arith.constant 0 : index
    %c0_31 = arith.constant 0 : index
    %40 = vector.load %arg5[%c0_30, %c0_31] : memref<1x128xf32, #tpu.memory_space<vmem>>, vector<1x128xf32>
    %41 = vector.broadcast %40 : vector<1x128xf32> to vector<128x128xf32>
    %42 = arith.addf %39, %41 : vector<128x128xf32>
    %cst_32 = arith.constant 0.000000e+00 : f32
    %43 = vector.broadcast %cst_32 : f32 to vector<128x128xf32>
    %44 = arith.maximumf %42, %43 : vector<128x128xf32>
    %c0_33 = arith.constant 0 : index
    %c0_34 = arith.constant 0 : index
    %45 = vector.load %arg6[%c0_33, %c0_34] : memref<128x128xf32, #tpu.memory_space<vmem>>, vector<128x128xf32>
    %cst_35 = arith.constant dense<0.000000e+00> : vector<128x128xf32>
    %46 = tpu.matmul %44, %45, %cst_35 {dimension_numbers = #tpu.dot_dimension_numbers<[1], [0], [0], [1], [0, 0, 1, 1], [], []>} : vector<128x128xf32>, vector<128x128xf32>, vector<128x128xf32> -> vector<128x128xf32>
    %c0_36 = arith.constant 0 : index
    %c0_37 = arith.constant 0 : index
    %47 = vector.load %arg7[%c0_36, %c0_37] : memref<1x128xf32, #tpu.memory_space<vmem>>, vector<1x128xf32>
    %48 = vector.broadcast %47 : vector<1x128xf32> to vector<128x128xf32>
    %49 = arith.addf %46, %48 : vector<128x128xf32>
    %c0_38 = arith.constant 0 : index
    %c0_39 = arith.constant 0 : index
    %50 = vector.load %arg8[%c0_38, %c0_39] : memref<128x128xf32, #tpu.memory_space<vmem>>, vector<128x128xf32>
    tpu.vector_store %arg8[%c0_38, %c0_39], %49 {strides = array<i32>} : memref<128x128xf32, #tpu.memory_space<vmem>>, vector<128x128xf32>,
    return
  }
}

</mosaic_0001>

<bundles_post_ra>
// kernel: forward.1
= control target key start
LH: loop header
LB: loop body
LE: loop exit
PB: predicated region body
PF: predicated region fallthrough
CT: control target
= control target key end

     0   :  { %13 = vsyncpa [#allocation3], 0  ;;  %s1176_s30 = smov [#allocation2]   ;;  %s1177_s10 = smov 128   ;;  %s1682_s0 = inlined_call_operand.vmem [shape: f32[128,128], index: 0, kind: input, shape index: {}]   ;;  %s1683_s1 = inlined_call_operand.vmem [shape: bf16[128,128], index: 1, kind: input, shape index: {}]   ;;  %s1684_s2 = inlined_call_operand.hbm [shape: f32[3,256,128], index: 2, kind: input, shape index: {}]   ;;  %s1685_s3 = inlined_call_operand.vmem [shape: f32[3,1,128], index: 3, kind: input, shape index: {}]   ;;  %s1686_s4 = inlined_call_operand.vmem [shape: f32[128,128], index: 4, kind: input, shape index: {}]   ;;  %s1687_s5 = inlined_call_operand.vmem [shape: f32[1,128], index: 5, kind: input, shape index: {}]   ;;  %s1688_s6 = inlined_call_operand.vmem [shape: f32[128,128], index: 6, kind: input, shape index: {}]   ;;  %s1689_s7 = inlined_call_operand.vmem [shape: f32[1,128], index: 7, kind: input, shape index: {}]   ;;  %s1690_s8 = inlined_call_operand.vmem [shape: f32[128,128], index: 8, kind: output, shape index: {}]  }
   0x1   :  { %s22_s29 = sshll.u32 %s1684_s2, 4  ;;  %s24_s9 = sshll.u32 %s1176_s30, 4  ;;  %s23_s29 = int_to_ptr.hbm [resolvable:$true] %s22_s29  ;;  %s25_s9 = int_to_ptr.vmem [resolvable:$true] %s24_s9 }
   0x2   :  { %s1178_s11 = smov 8  }
   0x3   :  { %30 = dma.hbm_to_vmem [thread:$0]  %s23_s29, 12288, %s25_s9, [#allocation3], %s1177_s10, %s1177_s10, %s1178_s11  }
   0x4   :  { %1174 = dma.done.wait [#allocation3], 12288  }
   0x5   :  { %1175 = vsyncadd [#allocation3], 4294955008  ;;  %v1230_v0 = vld [vmem:[%s1682_s0 + $0x70] sm:$0xff]  ;;  %v1235_v1 = vld [vmem:[%s1682_s0 + $0x78] sm:$0xff] }
   0x6   :  { %v1240_v2 = vld [vmem:[%s1682_s0 + $0x60] sm:$0xff]  ;;  %v84_v3 = vpack.c.bf16 %v1235_v1, %v1230_v0  ;;  %v1247_v4 = vld [vmem:[%s1682_s0 + $0x68] sm:$0xff]  ;;  %v1254_v6 = vld [vmem:[%s1682_s0 + $0x50] sm:$0xff] }
   0x7   :  { %v83_v5 = vpack.c.bf16 %v1247_v4, %v1240_v2  ;;  %v1259_v7 = vld [vmem:[%s1682_s0 + $0x58] sm:$0xff]  ;;  %v1266_v9 = vld [vmem:[%s1682_s0 + $0x40] sm:$0xff]  ;;  %v1271_v10 = vld [vmem:[%s1682_s0 + $0x48] sm:$0xff] }
   0x8   :  { %133 = vmatpush.bf16.msra.mxu0 %v84_v3  ;;  %1095 = vmatpush.bf16.msra.mxu3 %v84_v3  ;;  %v82_v8 = vpack.c.bf16 %v1259_v7, %v1254_v6  ;;  %v81_v11 = vpack.c.bf16 %v1271_v10, %v1266_v9  ;;  %v1278_v12 = vld [vmem:[%s1682_s0 + $0x30] sm:$0xff]  ;;  %v1283_v13 = vld [vmem:[%s1682_s0 + $0x38] sm:$0xff]  ;;  %v1290_v15 = vld [vmem:[%s1682_s0 + $0x20] sm:$0xff] }
   0x9   :  { %v80_v14 = vpack.c.bf16 %v1283_v13, %v1278_v12  ;;  %v1295_v16 = vld [vmem:[%s1682_s0 + $0x28] sm:$0xff]  ;;  %v1302_v18 = vld [vmem:[%s1682_s0 + $0x10] sm:$0xff]  ;;  %v1307_v19 = vld [vmem:[%s1682_s0 + $0x18] sm:$0xff] }
   0xa   :  { %v79_v17 = vpack.c.bf16 %v1295_v16, %v1290_v15  ;;  %v78_v20 = vpack.c.bf16 %v1307_v19, %v1302_v18  ;;  %v1314_v21 = vld [vmem:[%s1682_s0] sm:$0xff]  ;;  %v1319_v22 = vld [vmem:[%s1682_s0 + $0x8] sm:$0xff]  ;;  %v1331_v25 = vld [vmem:[%s1683_s1 + $0x10] sm:$0xff] }
   0xb   :  { %v77_v23 = vpack.c.bf16 %v1319_v22, %v1314_v21  ;;  %v1326_v24 = vld [vmem:[%s1683_s1] sm:$0xff]  ;;  %v1338_v26 = vld [vmem:[%s1683_s1 + $0x8] sm:$0xff]  ;;  %v1343_v27 = vld [vmem:[%s1683_s1 + $0x18] sm:$0xff] }
   0xc   :  { %134 = vmatpush.bf16.msra.mxu0 %v83_v5  ;;  %1096 = vmatpush.bf16.msra.mxu3 %v83_v5  ;;  %v1350_v28 = vld [vmem:[%s1683_s1 + $0x20] sm:$0xff]  ;;  %v1356_v29 = vld [vmem:[%s1683_s1 + $0x28] sm:$0xff]  ;;  %v197_v30 = vld [vmem:[#allocation2 + $0x78] sm:$0xff] }
   0xd   :  { %v196_v31 = vld [vmem:[#allocation2 + $0x70] sm:$0xff]  ;;  %v1359_v32 = vld [vmem:[#allocation2 + $0xf8] sm:$0xff]  ;;  %v195_v34 = vld [vmem:[#allocation2 + $0x68] sm:$0xff]  ;;  %1103 = vmatpush.msra.mxu1 %v197_v30 }
   0xe   :  { %1119 = vmatpush.msra.mxu2 %v1359_v32  ;;  %v1362_v33 = vld [vmem:[#allocation2 + $0xf0] sm:$0xff]  ;;  %v1364_v35 = vld [vmem:[#allocation2 + $0xe8] sm:$0xff]  ;;  %v194_v36 = vld [vmem:[#allocation2 + $0x60] sm:$0xff] }
   0xf   :  { %1104 = vmatpush.msra.mxu1 %v196_v31  ;;  %v1367_v37 = vld [vmem:[#allocation2 + $0xe0] sm:$0xff]  ;;  %v193_v38 = vld [vmem:[#allocation2 + $0x58] sm:$0xff]  ;;  %v192_v40 = vld [vmem:[#allocation2 + $0x50] sm:$0xff] }
  0x10   :  { %135 = vmatpush.bf16.msra.mxu0 %v82_v8  ;;  %1097 = vmatpush.bf16.msra.mxu3 %v82_v8  ;;  %v1370_v39 = vld [vmem:[#allocation2 + $0xd8] sm:$0xff]  ;;  %v1373_v41 = vld [vmem:[#allocation2 + $0xd0] sm:$0xff]  ;;  %v191_v42 = vld [vmem:[#allocation2 + $0x48] sm:$0xff] }
  0x11   :  { %1120 = vmatpush.msra.mxu2 %v1362_v33  ;;  %1105 = vmatpush.msra.mxu1 %v195_v34  ;;  %v1376_v43 = vld [vmem:[#allocation2 + $0xc8] sm:$0xff]  ;;  %v1382_v44 = vld [vmem:[%s1683_s1 + $0x30] sm:$0xff]  ;;  %v190_v45 = vld [vmem:[#allocation2 + $0x40] sm:$0xff] }
  0x12   :  { %v206_v46 = vld [vmem:[#allocation2 + $0xc0] sm:$0xff]  ;;  %v189_v47 = vld [vmem:[#allocation2 + $0x38] sm:$0xff]  ;;  %v188_v49 = vld [vmem:[#allocation2 + $0x30] sm:$0xff] }
  0x13   :  { %1121 = vmatpush.msra.mxu2 %v1364_v35  ;;  %1106 = vmatpush.msra.mxu1 %v194_v36  ;;  %v205_v48 = vld [vmem:[#allocation2 + $0xb8] sm:$0xff]  ;;  %v204_v50 = vld [vmem:[#allocation2 + $0xb0] sm:$0xff]  ;;  %v187_v51 = vld [vmem:[#allocation2 + $0x28] sm:$0xff] }
  0x14   :  { %136 = vmatpush.bf16.msra.mxu0 %v81_v11  ;;  %1098 = vmatpush.bf16.msra.mxu3 %v81_v11  ;;  %v203_v52 = vld [vmem:[#allocation2 + $0xa8] sm:$0xff]  ;;  %v186_v53 = vld [vmem:[#allocation2 + $0x20] sm:$0xff]  ;;  %v185_v55 = vld [vmem:[#allocation2 + $0x18] sm:$0xff] }
  0x15   :  { %1122 = vmatpush.msra.mxu2 %v1367_v37  ;;  %1107 = vmatpush.msra.mxu1 %v193_v38  ;;  %v202_v54 = vld [vmem:[#allocation2 + $0xa0] sm:$0xff]  ;;  %v201_v56 = vld [vmem:[#allocation2 + $0x98] sm:$0xff]  ;;  %v184_v57 = vld [vmem:[#allocation2 + $0x10] sm:$0xff] }
  0x16   :  { %v200_v58 = vld [vmem:[#allocation2 + $0x90] sm:$0xff]  ;;  %v183_v59 = vld [vmem:[#allocation2 + $0x8] sm:$0xff]  ;;  %v1389_v60 = vld [vmem:[%s1683_s1 + $0x38] sm:$0xff] }
  0x17   :  { %1123 = vmatpush.msra.mxu2 %v1370_v39  ;;  %1108 = vmatpush.msra.mxu1 %v192_v40  ;;  %v182_v61 = vld [vmem:[#allocation2] sm:$0xff]  ;;  %v199_v62 = vld [vmem:[#allocation2 + $0x88] sm:$0xff] }
  0x18   :  { %137 = vmatpush.bf16.msra.mxu0 %v80_v14  ;;  %1099 = vmatpush.bf16.msra.mxu3 %v80_v14  ;;  %v198_v63 = vld [vmem:[#allocation2 + $0x80] sm:$0xff] }
  0x19   :  { %1124 = vmatpush.msra.mxu2 %v1373_v41  ;;  %1109 = vmatpush.msra.mxu1 %v191_v42 }
  0x1b   :  { %1125 = vmatpush.msra.mxu2 %v1376_v43  ;;  %1110 = vmatpush.msra.mxu1 %v190_v45 }
  0x1c   :  { %138 = vmatpush.bf16.msra.mxu0 %v79_v17  ;;  %1100 = vmatpush.bf16.msra.mxu3 %v79_v17 }
  0x1d   :  { %1126 = vmatpush.msra.mxu2 %v206_v46  ;;  %1111 = vmatpush.msra.mxu1 %v189_v47 }
  0x1f   :  { %1127 = vmatpush.msra.mxu2 %v205_v48  ;;  %1112 = vmatpush.msra.mxu1 %v188_v49 }
  0x20   :  { %139 = vmatpush.bf16.msra.mxu0 %v78_v20  ;;  %1101 = vmatpush.bf16.msra.mxu3 %v78_v20  ;;  %v453_v20 = vld [vmem:[#allocation2 + $0x1f8] sm:$0xff] }
  0x21   :  { %1128 = vmatpush.msra.mxu2 %v204_v50  ;;  %1113 = vmatpush.msra.mxu1 %v187_v51 }
  0x23   :  { %1129 = vmatpush.msra.mxu2 %v203_v52  ;;  %1114 = vmatpush.msra.mxu1 %v186_v53 }
  0x24   :  { %140 = vmatpush.bf16.msra.mxu0 %v77_v23  ;;  %1102 = vmatpush.bf16.msra.mxu3 %v77_v23  ;;  %v447_v23 = vld [vmem:[#allocation2 + $0x1c8] sm:$0xff] }
  0x25   :  { %1130 = vmatpush.msra.mxu2 %v202_v54  ;;  %1115 = vmatpush.msra.mxu1 %v185_v55 }
  0x27   :  { %141 = vmatmul.bf16.vlgmr.msra.gmra.mxu0 %v1326_v24  ;;  %151 = vmatmul.bf16.vlgmr.msra.gmra.mxu3 %v1331_v25 }
  0x28   :  { %218 = vmatpush.msrb.mxu0 %v197_v30  ;;  %1131 = vmatpush.msra.mxu2 %v201_v56  ;;  %v446_v30 = vld [vmem:[#allocation2 + $0x1c0] sm:$0xff] }
  0x29   :  { %1116 = vmatpush.msra.mxu1 %v184_v57 }
  0x2a   :  { %219 = vmatpush.msrb.mxu0 %v196_v31  ;;  %1132 = vmatpush.msra.mxu2 %v200_v58  ;;  %v445_v31 = vld [vmem:[#allocation2 + $0x1b8] sm:$0xff] }
  0x2b   :  { %1117 = vmatpush.msra.mxu1 %v183_v59 }
  0x2c   :  { %220 = vmatpush.msrb.mxu0 %v195_v34  ;;  %1133 = vmatpush.msra.mxu2 %v199_v62 }
  0x2d   :  { %1118 = vmatpush.msra.mxu1 %v182_v61 }
  0x2e   :  { %221 = vmatpush.msrb.mxu0 %v194_v36  ;;  %1134 = vmatpush.msra.mxu2 %v198_v63  ;;  %v441_v36 = vld [vmem:[#allocation2 + $0x198] sm:$0xff] }
  0x2f   :  { %311 = vmatmul.f32.vlgmr.msra.gmra.mxu2 %v1290_v15  ;;  %524 = vmatpush.msrb.mxu1 %v453_v20 }
  0x30   :  { %222 = vmatpush.msrb.mxu0 %v193_v38 }
  0x32   :  { %223 = vmatpush.msrb.mxu0 %v192_v40  ;;  %v438_v40 = vld [vmem:[#allocation2 + $0x180] sm:$0xff] }
  0x34   :  { %224 = vmatpush.msrb.mxu0 %v191_v42 }
  0x36   :  { %225 = vmatpush.msrb.mxu0 %v190_v45 }
  0x37   :  { %146 = vmatmul.bf16.gmra.mxu0 %v1338_v26  ;;  %156 = vmatmul.bf16.gmra.mxu3 %v1343_v27 }
  0x38   :  { %226 = vmatpush.msrb.mxu0 %v189_v47  ;;  %314 = vmatmul.f32.gmra.mxu2 %v1295_v16 }
  0x3a   :  { %227 = vmatpush.msrb.mxu0 %v188_v49 }
  0x3c   :  { %228 = vmatpush.msrb.mxu0 %v187_v51  ;;  %v1420_v51 = vld [vmem:[%s1685_s3] ss:$0 sm:$0xff] }
  0x3e   :  { %229 = vmatpush.msrb.mxu0 %v186_v53 }
  0x40   :  { %230 = vmatpush.msrb.mxu0 %v185_v55  ;;  %317 = vmatmul.f32.gmra.mxu2 %v1278_v12 }
  0x42   :  { %231 = vmatpush.msrb.mxu0 %v184_v57 }
  0x44   :  { %232 = vmatpush.msrb.mxu0 %v183_v59 }
  0x46   :  { %233 = vmatpush.msrb.mxu0 %v182_v61 }
  0x47   :  { %161 = vmatmul.bf16.gmra.mxu3 %v1350_v28 }
  0x48   :  { %283 = vmatpush.msra.mxu0 %v1359_v32  ;;  %320 = vmatmul.f32.gmra.mxu2 %v1283_v13  ;;  %v444_v32 = vld [vmem:[#allocation2 + $0x1b0] sm:$0xff] }
  0x4a   :  { %284 = vmatpush.msra.mxu0 %v1362_v33  ;;  %v443_v33 = vld [vmem:[#allocation2 + $0x1a8] sm:$0xff] }
  0x4c   :  { %285 = vmatpush.msra.mxu0 %v1364_v35  ;;  %v442_v35 = vld [vmem:[#allocation2 + $0x1a0] sm:$0xff] }
  0x4e   :  { %286 = vmatpush.msra.mxu0 %v1367_v37  ;;  %v440_v37 = vld [vmem:[#allocation2 + $0x190] sm:$0xff] }
  0x50   :  { %287 = vmatpush.msra.mxu0 %v1370_v39  ;;  %323 = vmatmul.f32.gmra.mxu2 %v1266_v9  ;;  %v439_v39 = vld [vmem:[#allocation2 + $0x188] sm:$0xff] }
  0x52   :  { %288 = vmatpush.msra.mxu0 %v1373_v41 }
  0x54   :  { %289 = vmatpush.msra.mxu0 %v1376_v43 }
  0x56   :  { %290 = vmatpush.msra.mxu0 %v206_v46 }
  0x57   :  { %166 = vmatmul.bf16.gmra.mxu3 %v1356_v29 }
  0x58   :  { %291 = vmatpush.msra.mxu0 %v205_v48  ;;  %326 = vmatmul.f32.gmra.mxu2 %v1271_v10 }
  0x5a   :  { %292 = vmatpush.msra.mxu0 %v204_v50 }
  0x5c   :  { %293 = vmatpush.msra.mxu0 %v203_v52 }
  0x5e   :  { %294 = vmatpush.msra.mxu0 %v202_v54 }
  0x60   :  { %295 = vmatpush.msra.mxu0 %v201_v56  ;;  %329 = vmatmul.f32.gmra.mxu2 %v1254_v6 }
  0x62   :  { %296 = vmatpush.msra.mxu0 %v200_v58 }
  0x64   :  { %297 = vmatpush.msra.mxu0 %v199_v62 }
  0x66   :  { %298 = vmatpush.msra.mxu0 %v198_v63 }
  0x67   :  { %171 = vmatmul.bf16.gmra.mxu3 %v1382_v44 }
  0x68   :  { %332 = vmatmul.f32.gmra.mxu2 %v1259_v7 }
  0x70   :  { %335 = vmatmul.f32.gmra.mxu2 %v1240_v2 }
  0x77   :  { %176 = vmatmul.bf16.gmra.mxu3 %v1389_v60 }
  0x78   :  { %338 = vmatmul.f32.gmra.mxu2 %v1247_v4 }
  0x80   :  { %341 = vmatmul.f32.gmra.mxu2 %v1230_v0  ;;  %v451_v0 = vld [vmem:[#allocation2 + $0x1e8] sm:$0xff] }
  0x88   :  { %344 = vmatmul.f32.gmra.mxu2 %v1235_v1  ;;  %v448_v1 = vld [vmem:[#allocation2 + $0x1d0] sm:$0xff] }
  0xa4   :  { %v142_v3 = vpop.f32.mrf.mxu0 }
  0xa5   :  { %234 = vmatmul.f32.vlgmr.msrb.gmra.mxu0 %v142_v3 }
  0xaa   :  { %v152_v5 = vpop.f32.mrf.mxu3 }
  0xab   :  { %246 = vmatmul.f32.vlgmr.msra.gmra.mxu1 %v152_v5 }
  0xac   :  { %v144_v8 = vpop.f32.mrf.mxu0 }
  0xad   :  { %237 = vmatmul.f32.gmra.mxu0 %v144_v8 }
  0xb2   :  { %v154_v11 = vpop.f32.mrf.mxu3 }
  0xb3   :  { %249 = vmatmul.f32.gmra.mxu1 %v154_v11 }
  0xb4   :  { %v147_v12 = vpop.f32.mrf.mxu0 }
  0xb5   :  { %240 = vmatmul.f32.gmra.mxu0 %v147_v12 }
  0xba   :  { %v157_v13 = vpop.f32.mrf.mxu3 }
  0xbb   :  { %252 = vmatmul.f32.gmra.mxu1 %v157_v13 }
  0xbc   :  { %v149_v14 = vpop.f32.mrf.mxu0 }
  0xbd   :  { %243 = vmatmul.f32.gmra.mxu0 %v149_v14 }
  0xc2   :  { %v159_v15 = vpop.f32.mrf.mxu3 }
  0xc3   :  { %255 = vmatmul.f32.gmra.mxu1 %v159_v15 }
  0xc5   :  { %299 = vmatmul.f32.vlgmr.msra.gmra.mxu0 %v1314_v21  ;;  %v450_v21 = vld [vmem:[#allocation2 + $0x1e0] sm:$0xff] }
  0xca   :  { %v162_v9 = vpop.f32.mrf.mxu3 }
  0xcb   :  { %258 = vmatmul.f32.gmra.mxu1 %v162_v9 }
  0xcd   :  { %302 = vmatmul.f32.gmra.mxu0 %v1319_v22  ;;  %v1415_v22 = vpop.f32.mrf.mxu2 }
  0xd2   :  { %v164_v10 = vpop.f32.mrf.mxu3 }
  0xd3   :  { %261 = vmatmul.f32.gmra.mxu1 %v164_v10 }
  0xd5   :  { %305 = vmatmul.f32.gmra.mxu0 %v1302_v18  ;;  %v452_v18 = vld [vmem:[#allocation2 + $0x1f0] sm:$0xff]  ;;  %v315_v34 = vpop.f32.mrf.mxu2 }
  0xd6   :  { %525 = vmatpush.msrb.mxu1 %v452_v18 }
  0xd8   :  { %526 = vmatpush.msrb.mxu1 %v451_v0 }
  0xda   :  { %v167_v6 = vpop.f32.mrf.mxu3  ;;  %527 = vmatpush.msrb.mxu1 %v450_v21 }
  0xdb   :  { %264 = vmatmul.f32.gmra.mxu1 %v167_v6 }
  0xdd   :  { %308 = vmatmul.f32.gmra.mxu0 %v1307_v19  ;;  %v449_v19 = vld [vmem:[#allocation2 + $0x1d8] sm:$0xff]  ;;  %v318_v41 = vpop.f32.mrf.mxu2 }
  0xde   :  { %528 = vmatpush.msrb.mxu1 %v449_v19 }
  0xe0   :  { %529 = vmatpush.msrb.mxu1 %v448_v1 }
  0xe2   :  { %v169_v7 = vpop.f32.mrf.mxu3  ;;  %530 = vmatpush.msrb.mxu1 %v447_v23 }
  0xe3   :  { %267 = vmatmul.f32.gmra.mxu1 %v169_v7 }
  0xe4   :  { %531 = vmatpush.msrb.mxu1 %v446_v30 }
  0xe5   :  { %v321_v46 = vpop.f32.mrf.mxu2 }
  0xe6   :  { %532 = vmatpush.msrb.mxu1 %v445_v31 }
  0xe8   :  { %533 = vmatpush.msrb.mxu1 %v444_v32 }
  0xea   :  { %v172_v2 = vpop.f32.mrf.mxu3  ;;  %534 = vmatpush.msrb.mxu1 %v443_v33 }
  0xeb   :  { %270 = vmatmul.f32.gmra.mxu1 %v172_v2 }
  0xec   :  { %535 = vmatpush.msrb.mxu1 %v442_v35 }
  0xed   :  { %v324_v50 = vpop.f32.mrf.mxu2 }
  0xee   :  { %536 = vmatpush.msrb.mxu1 %v441_v36 }
  0xf0   :  { %537 = vmatpush.msrb.mxu1 %v440_v37 }
  0xf2   :  { %v174_v16 = vpop.f32.mrf.mxu3  ;;  %538 = vmatpush.msrb.mxu1 %v439_v39 }
  0xf3   :  { %273 = vmatmul.f32.gmra.mxu1 %v174_v16 }
  0xf4   :  { %539 = vmatpush.msrb.mxu1 %v438_v40 }
  0xf5   :  { %v1423_v56 = vpop.f32.mrf.mxu2 }
  0xfa   :  { %v177_v17 = vpop.f32.mrf.mxu3 }
  0xfb   :  { %276 = vmatmul.f32.gmra.mxu1 %v177_v17 }
  0xfd   :  { %v1426_v3 = vpop.f32.mrf.mxu2 }
 0x102   :  { %v179_v4 = vpop.f32.mrf.mxu3 }
 0x103   :  { %279 = vmatmul.f32.gmra.mxu1 %v179_v4 }
 0x105   :  { %v333_v10 = vpop.f32.mrf.mxu2 }
 0x10d   :  { %v336_v18 = vpop.f32.mrf.mxu2 }
 0x115   :  { %v339_v23 = vpop.f32.mrf.mxu2 }
 0x11d   :  { %v342_v37 = vpop.f32.mrf.mxu2 }
 0x122   :  { %v235_v38 = vpop.f32.mrf.mxu0 }
 0x123   :  { %v236_v52 = vadd.f32 %v1420_v51, %v235_v38 }
 0x128   :  { %v247_v42 = vpop.f32.mrf.mxu1 }
 0x129   :  { %v248_v2 = vadd.f32 %v1420_v51, %v247_v42 }
 0x12a   :  { %v238_v43 = vpop.f32.mrf.mxu0 }
 0x12b   :  { %v239_v58 = vadd.f32 %v1420_v51, %v238_v43  ;;  %v313_v20 = vadd.f32 %v1415_v22, %v248_v2  ;;  %v435_v2 = vld [vmem:[#allocation2 + $0x168] sm:$0xff] }
 0x12d   :  { %v352_v0 = vmax.f32 %v313_v20, 0.0  ;;  %v425_v20 = vld [vmem:[#allocation2 + $0x118] sm:$0xff] }
 0x130   :  { %v250_v45 = vpop.f32.mrf.mxu1 }
 0x131   :  { %v251_v21 = vadd.f32 %v1420_v51, %v250_v45 }
 0x132   :  { %v241_v47 = vpop.f32.mrf.mxu0 }
 0x133   :  { %v242_v5 = vadd.f32 %v1420_v51, %v241_v47  ;;  %v316_v1 = vadd.f32 %v315_v34, %v251_v21  ;;  %v345_v47 = vpop.f32.mrf.mxu2 }
 0x135   :  { %v353_v31 = vmax.f32 %v316_v1, 0.0 }
 0x138   :  { %v253_v48 = vpop.f32.mrf.mxu1 }
 0x139   :  { %v254_v30 = vadd.f32 %v1420_v51, %v253_v48 }
 0x13a   :  { %v244_v49 = vpop.f32.mrf.mxu0 }
 0x13b   :  { %v245_v15 = vadd.f32 %v1420_v51, %v244_v49  ;;  %v319_v33 = vadd.f32 %v318_v41, %v254_v30 }
 0x13d   :  { %v354_v35 = vmax.f32 %v319_v33, 0.0 }
 0x140   :  { %v256_v53 = vpop.f32.mrf.mxu1 }
 0x141   :  { %v257_v36 = vadd.f32 %v1420_v51, %v256_v53 }
 0x142   :  { %v300_v54 = vpop.f32.mrf.mxu0 }
 0x143   :  { %v301_v55 = vadd.f32 %v300_v54, %v236_v52  ;;  %v322_v38 = vadd.f32 %v321_v46, %v257_v36  ;;  %v693_v36 = vld [vmem:[#allocation2 + $0x2f0] sm:$0xff] }
 0x145   :  { %v348_v57 = vmax.f32 %v301_v55, 0.0  ;;  %v355_v42 = vmax.f32 %v322_v38, 0.0  ;;  %v691_v38 = vld [vmem:[#allocation2 + $0x2e0] sm:$0xff] }
 0x147   :  { %540 = vmatmul.f32.vlgmr.msrb.gmra.mxu1 %v348_v57 }
 0x148   :  { %v259_v59 = vpop.f32.mrf.mxu1 }
 0x149   :  { %v260_v39 = vadd.f32 %v1420_v51, %v259_v59 }
 0x14a   :  { %v303_v61 = vpop.f32.mrf.mxu0 }
 0x14b   :  { %v304_v62 = vadd.f32 %v303_v61, %v239_v58  ;;  %v325_v43 = vadd.f32 %v324_v50, %v260_v39  ;;  %v690_v39 = vld [vmem:[#allocation2 + $0x2d8] sm:$0xff] }
 0x14d   :  { %v349_v63 = vmax.f32 %v304_v62, 0.0  ;;  %v356_v55 = vmax.f32 %v325_v43, 0.0  ;;  %v687_v43 = vld [vmem:[#allocation2 + $0x2c0] sm:$0xff] }
 0x14f   :  { %543 = vmatmul.f32.gmra.mxu1 %v349_v63  ;;  %v1429_v8 = vpack.c.bf16 %v349_v63, %v348_v57 }
 0x150   :  { %v262_v11 = vpop.f32.mrf.mxu1 }
 0x151   :  { %v263_v54 = vadd.f32 %v1420_v51, %v262_v11 }
 0x152   :  { %v306_v12 = vpop.f32.mrf.mxu0 }
 0x153   :  { %v307_v13 = vadd.f32 %v306_v12, %v242_v5  ;;  %v328_v5 = vadd.f32 %v1423_v56, %v263_v54  ;;  %v437_v56 = vld [vmem:[#allocation2 + $0x178] sm:$0xff]  ;;  %v680_v54 = vld [vmem:[#allocation2 + $0x288] sm:$0xff] }
 0x154   :  { %459 = vmatpush.msrb.mxu0 %v437_v56 }
 0x155   :  { %v350_v14 = vmax.f32 %v307_v13, 0.0  ;;  %v357_v11 = vmax.f32 %v328_v5, 0.0 }
 0x157   :  { %546 = vmatmul.f32.gmra.mxu1 %v350_v14 }
 0x158   :  { %v265_v9 = vpop.f32.mrf.mxu1 }
 0x159   :  { %v266_v57 = vadd.f32 %v1420_v51, %v265_v9  ;;  %v368_v9 = vpack.c.bf16 %v357_v11, %v356_v55 }
 0x15a   :  { %v309_v6 = vpop.f32.mrf.mxu0 }
 0x15b   :  { %v310_v7 = vadd.f32 %v309_v6, %v245_v15  ;;  %v331_v12 = vadd.f32 %v1426_v3, %v266_v57  ;;  %v436_v3 = vld [vmem:[#allocation2 + $0x170] sm:$0xff]  ;;  %v679_v57 = vld [vmem:[#allocation2 + $0x280] sm:$0xff] }
 0x15c   :  { %460 = vmatpush.msrb.mxu0 %v436_v3 }
 0x15d   :  { %v351_v16 = vmax.f32 %v310_v7, 0.0  ;;  %v358_v6 = vmax.f32 %v331_v12, 0.0  ;;  %v366_v7 = vpack.c.bf16 %v353_v31, %v352_v0 }
 0x15e   :  { %461 = vmatpush.msrb.mxu0 %v435_v2 }
 0x15f   :  { %549 = vmatmul.f32.gmra.mxu1 %v351_v16  ;;  %v1433_v17 = vpack.c.bf16 %v351_v16, %v350_v14  ;;  %v432_v16 = vld [vmem:[#allocation2 + $0x150] sm:$0xff] }
 0x160   :  { %v268_v4 = vpop.f32.mrf.mxu1 }
 0x161   :  { %v269_v52 = vadd.f32 %v1420_v51, %v268_v4  ;;  %v426_v4 = vld [vmem:[#allocation2 + $0x120] sm:$0xff] }
 0x163   :  { %v334_v50 = vadd.f32 %v333_v10, %v269_v52  ;;  %v367_v10 = vpack.c.bf16 %v355_v42, %v354_v35  ;;  %v682_v52 = vld [vmem:[#allocation2 + $0x298] sm:$0xff] }
 0x165   :  { %v359_v14 = vmax.f32 %v334_v50, 0.0 }
 0x167   :  { %552 = vmatmul.f32.gmra.mxu1 %v352_v0  ;;  %v423_v0 = vld [vmem:[#allocation2 + $0x108] sm:$0xff] }
 0x168   :  { %v271_v19 = vpop.f32.mrf.mxu1 }
 0x169   :  { %v272_v41 = vadd.f32 %v1420_v51, %v271_v19 }
 0x16b   :  { %v337_v58 = vadd.f32 %v336_v18, %v272_v41  ;;  %v424_v18 = vld [vmem:[#allocation2 + $0x110] sm:$0xff] }
 0x16d   :  { %v360_v13 = vmax.f32 %v337_v58, 0.0 }
 0x16f   :  { %555 = vmatmul.f32.gmra.mxu1 %v353_v31 }
 0x170   :  { %v274_v32 = vpop.f32.mrf.mxu1 }
 0x171   :  { %v275_v34 = vadd.f32 %v1420_v51, %v274_v32 }
 0x173   :  { %v340_v53 = vadd.f32 %v339_v23, %v275_v34  ;;  %v688_v34 = vld [vmem:[#allocation2 + $0x2c8] sm:$0xff] }
 0x175   :  { %v361_v62 = vmax.f32 %v340_v53, 0.0  ;;  %v681_v53 = vld [vmem:[#allocation2 + $0x290] sm:$0xff] }
 0x177   :  { %558 = vmatmul.f32.gmra.mxu1 %v354_v35  ;;  %v370_v15 = vpack.c.bf16 %v361_v62, %v360_v13  ;;  %v694_v35 = vld [vmem:[#allocation2 + $0x2f8] sm:$0xff] }
 0x178   :  { %v277_v22 = vpop.f32.mrf.mxu1 }
 0x179   :  { %v278_v40 = vadd.f32 %v1420_v51, %v277_v22  ;;  %v692_v22 = vld [vmem:[#allocation2 + $0x2e8] sm:$0xff] }
 0x17b   :  { %v343_v48 = vadd.f32 %v342_v37, %v278_v40  ;;  %v689_v40 = vld [vmem:[#allocation2 + $0x2d0] sm:$0xff] }
 0x17d   :  { %v362_v59 = vmax.f32 %v343_v48, 0.0  ;;  %v684_v48 = vld [vmem:[#allocation2 + $0x2a8] sm:$0xff] }
 0x17f   :  { %561 = vmatmul.f32.gmra.mxu1 %v355_v42 }
 0x180   :  { %v280_v45 = vpop.f32.mrf.mxu1 }
 0x181   :  { %v281_v49 = vadd.f32 %v1420_v51, %v280_v45  ;;  %v369_v51 = vpack.c.bf16 %v359_v14, %v358_v6  ;;  %v686_v45 = vld [vmem:[#allocation2 + $0x2b8] sm:$0xff] }
 0x183   :  { %v346_v46 = vadd.f32 %v345_v47, %v281_v49  ;;  %v685_v47 = vld [vmem:[#allocation2 + $0x2b0] sm:$0xff]  ;;  %v683_v49 = vld [vmem:[#allocation2 + $0x2a0] sm:$0xff] }
 0x185   :  { %v363_v61 = vmax.f32 %v346_v46, 0.0 }
 0x187   :  { %564 = vmatmul.f32.gmra.mxu1 %v356_v55  ;;  %v371_v63 = vpack.c.bf16 %v363_v61, %v362_v59 }
 0x189   :  { %372 = vmatpush.bf16.msrb.mxu3 %v371_v63  ;;  %v1462_v63 = vld [vmem:[%s1685_s3 + $0x1] ss:$0 sm:$0xff] }
 0x18d   :  { %373 = vmatpush.bf16.msrb.mxu3 %v370_v15 }
 0x18f   :  { %567 = vmatmul.f32.gmra.mxu1 %v357_v11 }
 0x191   :  { %374 = vmatpush.bf16.msrb.mxu3 %v369_v51 }
 0x195   :  { %375 = vmatpush.bf16.msrb.mxu3 %v368_v9 }
 0x197   :  { %570 = vmatmul.f32.gmra.mxu1 %v358_v6 }
 0x199   :  { %376 = vmatpush.bf16.msrb.mxu3 %v367_v10 }
 0x19d   :  { %377 = vmatpush.bf16.msrb.mxu3 %v366_v7 }
 0x19f   :  { %573 = vmatmul.f32.gmra.mxu1 %v359_v14 }
 0x1a1   :  { %378 = vmatpush.bf16.msrb.mxu3 %v1433_v17  ;;  %v427_v17 = vld [vmem:[#allocation2 + $0x128] sm:$0xff] }
 0x1a5   :  { %379 = vmatpush.bf16.msrb.mxu3 %v1429_v8  ;;  %v434_v8 = vld [vmem:[#allocation2 + $0x160] sm:$0xff] }
 0x1a6   :  { %462 = vmatpush.msrb.mxu0 %v434_v8 }
 0x1a7   :  { %576 = vmatmul.f32.gmra.mxu1 %v360_v13 }
 0x1a8   :  { %380 = vmatmul.bf16.vlgmr.msrb.gmra.mxu3 %v1326_v24  ;;  %v433_v24 = vld [vmem:[#allocation2 + $0x158] sm:$0xff] }
 0x1a9   :  { %463 = vmatpush.msrb.mxu0 %v433_v24 }
 0x1ab   :  { %464 = vmatpush.msrb.mxu0 %v432_v16 }
 0x1af   :  { %579 = vmatmul.f32.gmra.mxu1 %v361_v62 }
 0x1b7   :  { %582 = vmatmul.f32.gmra.mxu1 %v362_v59 }
 0x1b8   :  { %385 = vmatmul.bf16.gmra.mxu3 %v1338_v26  ;;  %v431_v26 = vld [vmem:[#allocation2 + $0x148] sm:$0xff] }
 0x1b9   :  { %465 = vmatpush.msrb.mxu0 %v431_v26 }
 0x1bf   :  { %585 = vmatmul.f32.gmra.mxu1 %v363_v61 }
 0x1c4   :  { %v541_v55 = vpop.f32.mrf.mxu1 }
 0x1c8   :  { %390 = vmatmul.bf16.gmra.mxu3 %v1331_v25  ;;  %v430_v25 = vld [vmem:[#allocation2 + $0x140] sm:$0xff] }
 0x1c9   :  { %466 = vmatpush.msrb.mxu0 %v430_v25 }
 0x1cc   :  { %v544_v59 = vpop.f32.mrf.mxu1 }
 0x1d4   :  { %v547_v50 = vpop.f32.mrf.mxu1 }
 0x1d8   :  { %395 = vmatmul.bf16.gmra.mxu3 %v1343_v27  ;;  %v429_v27 = vld [vmem:[#allocation2 + $0x138] sm:$0xff] }
 0x1d9   :  { %467 = vmatpush.msrb.mxu0 %v429_v27 }
 0x1dc   :  { %v550_v13 = vpop.f32.mrf.mxu1 }
 0x1e4   :  { %v553_v9 = vpop.f32.mrf.mxu1 }
 0x1e8   :  { %400 = vmatmul.bf16.gmra.mxu3 %v1350_v28  ;;  %v428_v28 = vld [vmem:[#allocation2 + $0x130] sm:$0xff] }
 0x1e9   :  { %468 = vmatpush.msrb.mxu0 %v428_v28 }
 0x1eb   :  { %469 = vmatpush.msrb.mxu0 %v427_v17 }
 0x1ec   :  { %v556_v24 = vpop.f32.mrf.mxu1 }
 0x1ed   :  { %470 = vmatpush.msrb.mxu0 %v426_v4 }
 0x1ef   :  { %471 = vmatpush.msrb.mxu0 %v425_v20 }
 0x1f1   :  { %472 = vmatpush.msrb.mxu0 %v424_v18 }
 0x1f3   :  { %473 = vmatpush.msrb.mxu0 %v423_v0 }
 0x1f4   :  { %v559_v17 = vpop.f32.mrf.mxu1 }
 0x1f8   :  { %405 = vmatmul.bf16.gmra.mxu3 %v1356_v29  ;;  %v422_v29 = vld [vmem:[#allocation2 + $0x100] sm:$0xff] }
 0x1f9   :  { %474 = vmatpush.msrb.mxu0 %v422_v29 }
 0x1fb   :  { %765 = vmatpush.msra.mxu0 %v694_v35 }
 0x1fd   :  { %766 = vmatpush.msra.mxu0 %v693_v36 }
 0x1ff   :  { %767 = vmatpush.msra.mxu0 %v692_v22 }
 0x201   :  { %768 = vmatpush.msra.mxu0 %v691_v38 }
 0x203   :  { %769 = vmatpush.msra.mxu0 %v690_v39 }
 0x205   :  { %770 = vmatpush.msra.mxu0 %v689_v40 }
 0x207   :  { %771 = vmatpush.msra.mxu0 %v688_v34 }
 0x208   :  { %410 = vmatmul.bf16.gmra.mxu3 %v1382_v44 }
 0x209   :  { %772 = vmatpush.msra.mxu0 %v687_v43 }
 0x20b   :  { %773 = vmatpush.msra.mxu0 %v686_v45 }
 0x20d   :  { %774 = vmatpush.msra.mxu0 %v685_v47 }
 0x20f   :  { %775 = vmatpush.msra.mxu0 %v684_v48 }
 0x211   :  { %776 = vmatpush.msra.mxu0 %v683_v49 }
 0x213   :  { %777 = vmatpush.msra.mxu0 %v682_v52 }
 0x215   :  { %778 = vmatpush.msra.mxu0 %v681_v53 }
 0x217   :  { %779 = vmatpush.msra.mxu0 %v680_v54 }
 0x218   :  { %415 = vmatmul.bf16.gmra.mxu3 %v1389_v60 }
 0x219   :  { %780 = vmatpush.msra.mxu0 %v679_v57 }
 0x22b   :  { %v381_v21 = vpop.f32.mrf.mxu3 }
 0x22c   :  { %475 = vmatmul.f32.vlgmr.msrb.gmra.mxu0 %v381_v21 }
 0x233   :  { %v383_v19 = vpop.f32.mrf.mxu3 }
 0x234   :  { %478 = vmatmul.f32.gmra.mxu0 %v383_v19  ;;  %v562_v19 = vpop.f32.mrf.mxu1 }
 0x23b   :  { %v386_v1 = vpop.f32.mrf.mxu3 }
 0x23c   :  { %481 = vmatmul.f32.gmra.mxu0 %v386_v1 }
 0x243   :  { %v388_v23 = vpop.f32.mrf.mxu3 }
 0x244   :  { %484 = vmatmul.f32.gmra.mxu0 %v388_v23 }
 0x24b   :  { %v391_v30 = vpop.f32.mrf.mxu3 }
 0x24c   :  { %487 = vmatmul.f32.gmra.mxu0 %v391_v30 }
 0x253   :  { %v393_v31 = vpop.f32.mrf.mxu3 }
 0x254   :  { %490 = vmatmul.f32.gmra.mxu0 %v393_v31 }
 0x25b   :  { %v396_v32 = vpop.f32.mrf.mxu3 }
 0x25c   :  { %493 = vmatmul.f32.gmra.mxu0 %v396_v32 }
 0x263   :  { %v398_v44 = vpop.f32.mrf.mxu3 }
 0x264   :  { %496 = vmatmul.f32.gmra.mxu0 %v398_v44 }
 0x26b   :  { %v401_v33 = vpop.f32.mrf.mxu3 }
 0x26c   :  { %499 = vmatmul.f32.gmra.mxu0 %v401_v33  ;;  %v565_v33 = vpop.f32.mrf.mxu1 }
 0x273   :  { %v403_v37 = vpop.f32.mrf.mxu3 }
 0x274   :  { %502 = vmatmul.f32.gmra.mxu0 %v403_v37  ;;  %v568_v39 = vpop.f32.mrf.mxu1 }
 0x27b   :  { %v406_v42 = vpop.f32.mrf.mxu3 }
 0x27c   :  { %505 = vmatmul.f32.gmra.mxu0 %v406_v42  ;;  %v571_v47 = vpop.f32.mrf.mxu1 }
 0x283   :  { %v408_v41 = vpop.f32.mrf.mxu3 }
 0x284   :  { %508 = vmatmul.f32.gmra.mxu0 %v408_v41  ;;  %v574_v54 = vpop.f32.mrf.mxu1 }
 0x28b   :  { %v411_v46 = vpop.f32.mrf.mxu3 }
 0x28c   :  { %511 = vmatmul.f32.gmra.mxu0 %v411_v46 }
 0x293   :  { %v413_v58 = vpop.f32.mrf.mxu3 }
 0x294   :  { %514 = vmatmul.f32.gmra.mxu0 %v413_v58 }
 0x29b   :  { %v416_v61 = vpop.f32.mrf.mxu3 }
 0x29c   :  { %517 = vmatmul.f32.gmra.mxu0 %v416_v61 }
 0x2a3   :  { %v418_v62 = vpop.f32.mrf.mxu3 }
 0x2a4   :  { %520 = vmatmul.f32.gmra.mxu0 %v418_v62 }
 0x2a9   :  { %v476_v5 = vpop.f32.mrf.mxu0 }
 0x2aa   :  { %v477_v12 = vadd.f32 %v1462_v63, %v476_v5 }
 0x2ac   :  { %v542_v14 = vadd.f32 %v541_v55, %v477_v12 }
 0x2ae   :  { %v589_v15 = vmax.f32 %v542_v14, 0.0 }
 0x2b0   :  { %781 = vmatmul.f32.vlgmr.msra.gmra.mxu0 %v589_v15 }
 0x2b1   :  { %v479_v6 = vpop.f32.mrf.mxu0 }
 0x2b2   :  { %v480_v11 = vadd.f32 %v1462_v63, %v479_v6 }
 0x2b4   :  { %v545_v51 = vadd.f32 %v544_v59, %v480_v11 }
 0x2b6   :  { %v590_v10 = vmax.f32 %v545_v51, 0.0 }
 0x2b8   :  { %784 = vmatmul.f32.gmra.mxu0 %v590_v10  ;;  %v1466_v7 = vpack.c.bf16 %v590_v10, %v589_v15 }
 0x2b9   :  { %v482_v56 = vpop.f32.mrf.mxu0 }
 0x2ba   :  { %v483_v3 = vadd.f32 %v1462_v63, %v482_v56 }
 0x2bc   :  { %v548_v2 = vadd.f32 %v547_v50, %v483_v3  ;;  %v577_v50 = vpop.f32.mrf.mxu1 }
 0x2be   :  { %v591_v8 = vmax.f32 %v548_v2, 0.0 }
 0x2c0   :  { %787 = vmatmul.f32.gmra.mxu0 %v591_v8 }
 0x2c1   :  { %v485_v16 = vpop.f32.mrf.mxu0 }
 0x2c2   :  { %v486_v26 = vadd.f32 %v1462_v63, %v485_v16 }
 0x2c4   :  { %v551_v25 = vadd.f32 %v550_v13, %v486_v26  ;;  %v580_v15 = vpop.f32.mrf.mxu1 }
 0x2c6   :  { %v592_v27 = vmax.f32 %v551_v25, 0.0 }
 0x2c8   :  { %790 = vmatmul.f32.gmra.mxu0 %v592_v27  ;;  %v1470_v28 = vpack.c.bf16 %v592_v27, %v591_v8 }
 0x2c9   :  { %v488_v4 = vpop.f32.mrf.mxu0 }
 0x2ca   :  { %v489_v20 = vadd.f32 %v1462_v63, %v488_v4 }
 0x2cc   :  { %v554_v18 = vadd.f32 %v553_v9, %v489_v20  ;;  %v583_v10 = vpop.f32.mrf.mxu1 }
 0x2ce   :  { %v593_v0 = vmax.f32 %v554_v18, 0.0 }
 0x2d0   :  { %793 = vmatmul.f32.gmra.mxu0 %v593_v0 }
 0x2d1   :  { %v491_v29 = vpop.f32.mrf.mxu0 }
 0x2d2   :  { %v492_v21 = vadd.f32 %v1462_v63, %v491_v29  ;;  %v1145_v29 = vld [vmem:[%s1683_s1 + $0x10] sm:$0xff] }
 0x2d4   :  { %v557_v1 = vadd.f32 %v556_v24, %v492_v21  ;;  %v586_v26 = vpop.f32.mrf.mxu1  ;;  %v678_v21 = vld [vmem:[#allocation2 + $0x278] sm:$0xff] }
 0x2d5   :  { %700 = vmatpush.msra.mxu3 %v678_v21 }
 0x2d6   :  { %v594_v23 = vmax.f32 %v557_v1, 0.0  ;;  %v675_v1 = vld [vmem:[#allocation2 + $0x260] sm:$0xff] }
 0x2d8   :  { %796 = vmatmul.f32.gmra.mxu0 %v594_v23  ;;  %v1474_v30 = vpack.c.bf16 %v594_v23, %v593_v0  ;;  %v1144_v0 = vld [vmem:[%s1683_s1 + $0x8] sm:$0xff]  ;;  %v1147_v23 = vld [vmem:[%s1683_s1 + $0x20] sm:$0xff] }
 0x2d9   :  { %v494_v31 = vpop.f32.mrf.mxu0 }
 0x2da   :  { %v495_v32 = vadd.f32 %v1462_v63, %v494_v31  ;;  %v673_v31 = vld [vmem:[#allocation2 + $0x250] sm:$0xff] }
 0x2dc   :  { %v560_v44 = vadd.f32 %v559_v17, %v495_v32  ;;  %v1148_v32 = vld [vmem:[%s1683_s1 + $0x28] sm:$0xff] }
 0x2de   :  { %v595_v35 = vmax.f32 %v560_v44, 0.0  ;;  %v672_v44 = vld [vmem:[#allocation2 + $0x248] sm:$0xff] }
 0x2e0   :  { %799 = vmatmul.f32.gmra.mxu0 %v595_v35 }
 0x2e1   :  { %v497_v36 = vpop.f32.mrf.mxu0 }
 0x2e2   :  { %v498_v37 = vadd.f32 %v1462_v63, %v497_v36  ;;  %v669_v36 = vld [vmem:[#allocation2 + $0x230] sm:$0xff] }
 0x2e4   :  { %v563_v22 = vadd.f32 %v562_v19, %v498_v37  ;;  %v676_v19 = vld [vmem:[#allocation2 + $0x268] sm:$0xff] }
 0x2e5   :  { %v668_v37 = vld [vmem:[#allocation2 + $0x228] sm:$0xff] }
 0x2e6   :  { %v596_v38 = vmax.f32 %v563_v22, 0.0  ;;  %v667_v22 = vld [vmem:[#allocation2 + $0x220] sm:$0xff] }
 0x2e8   :  { %802 = vmatmul.f32.gmra.mxu0 %v596_v38  ;;  %v608_v40 = vpack.c.bf16 %v596_v38, %v595_v35  ;;  %v670_v35 = vld [vmem:[#allocation2 + $0x238] sm:$0xff] }
 0x2e9   :  { %v500_v42 = vpop.f32.mrf.mxu0  ;;  %v666_v38 = vld [vmem:[#allocation2 + $0x218] sm:$0xff] }
 0x2ea   :  { %v501_v34 = vadd.f32 %v1462_v63, %v500_v42  ;;  %v1149_v42 = vld [vmem:[%s1683_s1 + $0x30] sm:$0xff] }
 0x2ec   :  { %v566_v43 = vadd.f32 %v565_v33, %v501_v34  ;;  %v671_v33 = vld [vmem:[#allocation2 + $0x240] sm:$0xff] }
 0x2ed   :  { %v663_v34 = vld [vmem:[#allocation2 + $0x200] sm:$0xff] }
 0x2ee   :  { %v597_v45 = vmax.f32 %v566_v43, 0.0 }
 0x2f0   :  { %805 = vmatmul.f32.gmra.mxu0 %v597_v45 }
 0x2f1   :  { %v503_v41 = vpop.f32.mrf.mxu0 }
 0x2f2   :  { %v504_v48 = vadd.f32 %v1462_v63, %v503_v41 }
 0x2f4   :  { %v569_v49 = vadd.f32 %v568_v39, %v504_v48  ;;  %v665_v39 = vld [vmem:[#allocation2 + $0x210] sm:$0xff] }
 0x2f6   :  { %v598_v52 = vmax.f32 %v569_v49, 0.0 }
 0x2f8   :  { %808 = vmatmul.f32.gmra.mxu0 %v598_v52  ;;  %v609_v18 = vpack.c.bf16 %v598_v52, %v597_v45  ;;  %v861_v52 = vld [vmem:[%s1686_s4 + $0x78] sm:$0xff] }
 0x2f9   :  { %v506_v53 = vpop.f32.mrf.mxu0  ;;  %866 = vmatpush.msra.mxu1 %v861_v52 }
 0x2fa   :  { %v507_v46 = vadd.f32 %v1462_v63, %v506_v53 }
 0x2fc   :  { %v572_v55 = vadd.f32 %v571_v47, %v507_v46 }
 0x2fe   :  { %v599_v57 = vmax.f32 %v572_v55, 0.0 }
 0x300   :  { %811 = vmatmul.f32.gmra.mxu0 %v599_v57 }
 0x301   :  { %v509_v58 = vpop.f32.mrf.mxu0 }
 0x302   :  { %v510_v59 = vadd.f32 %v1462_v63, %v509_v58 }
 0x304   :  { %v575_v61 = vadd.f32 %v574_v54, %v510_v59  ;;  %v859_v54 = vld [vmem:[%s1686_s4 + $0x68] sm:$0xff]  ;;  %v857_v59 = vld [vmem:[%s1686_s4 + $0x58] sm:$0xff] }
 0x306   :  { %v600_v62 = vmax.f32 %v575_v61, 0.0 }
 0x308   :  { %814 = vmatmul.f32.gmra.mxu0 %v600_v62  ;;  %v610_v20 = vpack.c.bf16 %v600_v62, %v599_v57  ;;  %v858_v57 = vld [vmem:[%s1686_s4 + $0x60] sm:$0xff]  ;;  %v855_v62 = vld [vmem:[%s1686_s4 + $0x48] sm:$0xff] }
 0x309   :  { %v512_v5 = vpop.f32.mrf.mxu0 }
 0x30a   :  { %v513_v12 = vadd.f32 %v1462_v63, %v512_v5 }
 0x30c   :  { %v578_v13 = vadd.f32 %v577_v50, %v513_v12  ;;  %v856_v50 = vld [vmem:[%s1686_s4 + $0x50] sm:$0xff]  ;;  %v854_v12 = vld [vmem:[%s1686_s4 + $0x40] sm:$0xff] }
 0x30e   :  { %v601_v14 = vmax.f32 %v578_v13, 0.0  ;;  %v853_v13 = vld [vmem:[%s1686_s4 + $0x38] sm:$0xff] }
 0x310   :  { %817 = vmatmul.f32.gmra.mxu0 %v601_v14 }
 0x311   :  { %v515_v6 = vpop.f32.mrf.mxu0 }
 0x312   :  { %v516_v11 = vadd.f32 %v1462_v63, %v515_v6  ;;  %v850_v6 = vld [vmem:[%s1686_s4 + $0x20] sm:$0xff] }
 0x314   :  { %v581_v51 = vadd.f32 %v580_v15, %v516_v11  ;;  %v851_v15 = vld [vmem:[%s1686_s4 + $0x28] sm:$0xff] }
 0x316   :  { %v602_v9 = vmax.f32 %v581_v51, 0.0  ;;  %v849_v51 = vld [vmem:[%s1686_s4 + $0x18] sm:$0xff] }
 0x318   :  { %820 = vmatmul.f32.gmra.mxu0 %v602_v9  ;;  %v611_v4 = vpack.c.bf16 %v602_v9, %v601_v14  ;;  %v852_v14 = vld [vmem:[%s1686_s4 + $0x30] sm:$0xff] }
 0x319   :  { %v518_v56 = vpop.f32.mrf.mxu0  ;;  %v848_v9 = vld [vmem:[%s1686_s4 + $0x10] sm:$0xff] }
 0x31a   :  { %v519_v3 = vadd.f32 %v1462_v63, %v518_v56 }
 0x31c   :  { %v584_v2 = vadd.f32 %v583_v10, %v519_v3  ;;  %v847_v10 = vld [vmem:[%s1686_s4 + $0x8] sm:$0xff] }
 0x31e   :  { %v603_v8 = vmax.f32 %v584_v2, 0.0  ;;  %v846_v2 = vld [vmem:[%s1686_s4] sm:$0xff] }
 0x320   :  { %823 = vmatmul.f32.gmra.mxu0 %v603_v8 }
 0x321   :  { %v521_v24 = vpop.f32.mrf.mxu0 }
 0x322   :  { %v522_v16 = vadd.f32 %v1462_v63, %v521_v24  ;;  %v1143_v63 = vld [vmem:[%s1683_s1] sm:$0xff] }
 0x324   :  { %v587_v25 = vadd.f32 %v586_v26, %v522_v16 }
 0x326   :  { %v604_v27 = vmax.f32 %v587_v25, 0.0  ;;  %v1562_v25 = vld [vmem:[%s1685_s3 + $0x2] ss:$0 sm:$0xff] }
 0x328   :  { %826 = vmatmul.f32.gmra.mxu0 %v604_v27  ;;  %v612_v17 = vpack.c.bf16 %v604_v27, %v603_v8 }
 0x32a   :  { %613 = vmatpush.bf16.msrb.mxu2 %v612_v17 }
 0x32d   :  { %v782_v56 = vpop.f32.mrf.mxu0 }
 0x32e   :  { %614 = vmatpush.bf16.msrb.mxu2 %v611_v4 }
 0x332   :  { %615 = vmatpush.bf16.msrb.mxu2 %v610_v20 }
 0x335   :  { %v785_v24 = vpop.f32.mrf.mxu0 }
 0x336   :  { %616 = vmatpush.bf16.msrb.mxu2 %v609_v18 }
 0x33a   :  { %617 = vmatpush.bf16.msrb.mxu2 %v608_v40  ;;  %v664_v40 = vld [vmem:[#allocation2 + $0x208] sm:$0xff] }
 0x33d   :  { %v788_v26 = vpop.f32.mrf.mxu0 }
 0x33e   :  { %618 = vmatpush.bf16.msrb.mxu2 %v1474_v30  ;;  %v674_v30 = vld [vmem:[#allocation2 + $0x258] sm:$0xff] }
 0x342   :  { %619 = vmatpush.bf16.msrb.mxu2 %v1470_v28  ;;  %v677_v28 = vld [vmem:[#allocation2 + $0x270] sm:$0xff] }
 0x343   :  { %701 = vmatpush.msra.mxu3 %v677_v28 }
 0x345   :  { %702 = vmatpush.msra.mxu3 %v676_v19  ;;  %v791_v4 = vpop.f32.mrf.mxu0 }
 0x346   :  { %620 = vmatpush.bf16.msrb.mxu2 %v1466_v7  ;;  %v1146_v7 = vld [vmem:[%s1683_s1 + $0x18] sm:$0xff] }
 0x347   :  { %703 = vmatpush.msra.mxu3 %v675_v1 }
 0x349   :  { %621 = vmatmul.bf16.vlgmr.msrb.gmra.mxu2 %v1143_v63  ;;  %704 = vmatpush.msra.mxu3 %v674_v30 }
 0x34b   :  { %705 = vmatpush.msra.mxu3 %v673_v31 }
 0x34d   :  { %706 = vmatpush.msra.mxu3 %v672_v44  ;;  %v794_v21 = vpop.f32.mrf.mxu0 }
 0x34f   :  { %707 = vmatpush.msra.mxu3 %v671_v33 }
 0x351   :  { %708 = vmatpush.msra.mxu3 %v670_v35 }
 0x353   :  { %709 = vmatpush.msra.mxu3 %v669_v36 }
 0x355   :  { %710 = vmatpush.msra.mxu3 %v668_v37  ;;  %v797_v30 = vpop.f32.mrf.mxu0 }
 0x357   :  { %711 = vmatpush.msra.mxu3 %v667_v22 }
 0x359   :  { %626 = vmatmul.bf16.gmra.mxu2 %v1144_v0  ;;  %712 = vmatpush.msra.mxu3 %v666_v38 }
 0x35b   :  { %713 = vmatpush.msra.mxu3 %v665_v39 }
 0x35d   :  { %714 = vmatpush.msra.mxu3 %v664_v40  ;;  %v800_v35 = vpop.f32.mrf.mxu0 }
 0x35f   :  { %715 = vmatpush.msra.mxu3 %v663_v34 }
 0x369   :  { %631 = vmatmul.bf16.gmra.mxu2 %v1145_v29 }
 0x379   :  { %636 = vmatmul.bf16.gmra.mxu2 %v1146_v7 }
 0x389   :  { %641 = vmatmul.bf16.gmra.mxu2 %v1147_v23 }
 0x399   :  { %646 = vmatmul.bf16.gmra.mxu2 %v1148_v32 }
 0x3a9   :  { %651 = vmatmul.bf16.gmra.mxu2 %v1149_v42  ;;  %v803_v42 = vpop.f32.mrf.mxu0 }
 0x3b9   :  { %656 = vmatmul.bf16.gmra.mxu2 %v1389_v60  ;;  %v860_v60 = vld [vmem:[%s1686_s4 + $0x70] sm:$0xff] }
 0x3ba   :  { %867 = vmatpush.msra.mxu1 %v860_v60 }
 0x3bc   :  { %868 = vmatpush.msra.mxu1 %v859_v54 }
 0x3be   :  { %869 = vmatpush.msra.mxu1 %v858_v57  ;;  %v960_v57 = vld [vmem:[%s1688_s6 + $0x68] sm:$0xff] }
 0x3c0   :  { %870 = vmatpush.msra.mxu1 %v857_v59 }
 0x3c2   :  { %871 = vmatpush.msra.mxu1 %v856_v50 }
 0x3c4   :  { %872 = vmatpush.msra.mxu1 %v855_v62 }
 0x3c6   :  { %873 = vmatpush.msra.mxu1 %v854_v12 }
 0x3c8   :  { %874 = vmatpush.msra.mxu1 %v853_v13 }
 0x3ca   :  { %875 = vmatpush.msra.mxu1 %v852_v14 }
 0x3cc   :  { %v622_v43 = vpop.f32.mrf.mxu2  ;;  %876 = vmatpush.msra.mxu1 %v851_v15 }
 0x3cd   :  { %716 = vmatmul.f32.vlgmr.msra.gmra.mxu3 %v622_v43 }
 0x3ce   :  { %877 = vmatpush.msra.mxu1 %v850_v6 }
 0x3d0   :  { %878 = vmatpush.msra.mxu1 %v849_v51 }
 0x3d2   :  { %879 = vmatpush.msra.mxu1 %v848_v9 }
 0x3d4   :  { %v624_v45 = vpop.f32.mrf.mxu2  ;;  %880 = vmatpush.msra.mxu1 %v847_v10 }
 0x3d5   :  { %719 = vmatmul.f32.gmra.mxu3 %v624_v45  ;;  %v962_v45 = vld [vmem:[%s1688_s6 + $0x78] sm:$0xff] }
 0x3d6   :  { %881 = vmatpush.msra.mxu1 %v846_v2  ;;  %967 = vmatpush.msra.mxu2 %v962_v45 }
 0x3dc   :  { %v627_v47 = vpop.f32.mrf.mxu2 }
 0x3dd   :  { %722 = vmatmul.f32.gmra.mxu3 %v627_v47 }
 0x3e4   :  { %v629_v41 = vpop.f32.mrf.mxu2 }
 0x3e5   :  { %725 = vmatmul.f32.gmra.mxu3 %v629_v41 }
 0x3ec   :  { %v632_v48 = vpop.f32.mrf.mxu2 }
 0x3ed   :  { %728 = vmatmul.f32.gmra.mxu3 %v632_v48 }
 0x3f4   :  { %v634_v49 = vpop.f32.mrf.mxu2 }
 0x3f5   :  { %731 = vmatmul.f32.gmra.mxu3 %v634_v49  ;;  %v806_v49 = vpop.f32.mrf.mxu0 }
 0x3fc   :  { %v637_v53 = vpop.f32.mrf.mxu2 }
 0x3fd   :  { %734 = vmatmul.f32.gmra.mxu3 %v637_v53  ;;  %v961_v53 = vld [vmem:[%s1688_s6 + $0x70] sm:$0xff] }
 0x3fe   :  { %968 = vmatpush.msra.mxu2 %v961_v53 }
 0x400   :  { %969 = vmatpush.msra.mxu2 %v960_v57 }
 0x404   :  { %v639_v46 = vpop.f32.mrf.mxu2 }
 0x405   :  { %737 = vmatmul.f32.gmra.mxu3 %v639_v46 }
 0x40c   :  { %v642_v55 = vpop.f32.mrf.mxu2 }
 0x40d   :  { %740 = vmatmul.f32.gmra.mxu3 %v642_v55 }
 0x414   :  { %v644_v58 = vpop.f32.mrf.mxu2 }
 0x415   :  { %743 = vmatmul.f32.gmra.mxu3 %v644_v58  ;;  %v809_v58 = vpop.f32.mrf.mxu0 }
 0x41c   :  { %v647_v61 = vpop.f32.mrf.mxu2 }
 0x41d   :  { %746 = vmatmul.f32.gmra.mxu3 %v647_v61  ;;  %v812_v12 = vpop.f32.mrf.mxu0 }
 0x424   :  { %v649_v5 = vpop.f32.mrf.mxu2 }
 0x425   :  { %749 = vmatmul.f32.gmra.mxu3 %v649_v5  ;;  %v959_v5 = vld [vmem:[%s1688_s6 + $0x60] sm:$0xff]  ;;  %v815_v10 = vpop.f32.mrf.mxu0 }
 0x426   :  { %970 = vmatpush.msra.mxu2 %v959_v5 }
 0x42c   :  { %v652_v11 = vpop.f32.mrf.mxu2 }
 0x42d   :  { %752 = vmatmul.f32.gmra.mxu3 %v652_v11  ;;  %v958_v11 = vld [vmem:[%s1688_s6 + $0x58] sm:$0xff] }
 0x42e   :  { %971 = vmatpush.msra.mxu2 %v958_v11 }
 0x434   :  { %v654_v3 = vpop.f32.mrf.mxu2 }
 0x435   :  { %755 = vmatmul.f32.gmra.mxu3 %v654_v3  ;;  %v957_v3 = vld [vmem:[%s1688_s6 + $0x50] sm:$0xff] }
 0x436   :  { %972 = vmatpush.msra.mxu2 %v957_v3 }
 0x43c   :  { %v657_v8 = vpop.f32.mrf.mxu2 }
 0x43d   :  { %758 = vmatmul.f32.gmra.mxu3 %v657_v8  ;;  %v956_v8 = vld [vmem:[%s1688_s6 + $0x48] sm:$0xff] }
 0x43e   :  { %973 = vmatpush.msra.mxu2 %v956_v8 }
 0x444   :  { %v659_v16 = vpop.f32.mrf.mxu2 }
 0x445   :  { %761 = vmatmul.f32.gmra.mxu3 %v659_v16 }
 0x450   :  { %v717_v27 = vpop.f32.mrf.mxu3 }
 0x451   :  { %v718_v17 = vadd.f32 %v1562_v25, %v717_v27  ;;  %v954_v27 = vld [vmem:[%s1688_s6 + $0x38] sm:$0xff] }
 0x453   :  { %v783_v20 = vadd.f32 %v782_v56, %v718_v17 }
 0x455   :  { %v830_v18 = vmax.f32 %v783_v20, 0.0  ;;  %v818_v20 = vpop.f32.mrf.mxu0 }
 0x457   :  { %882 = vmatmul.f32.vlgmr.msra.gmra.mxu1 %v830_v18 }
 0x458   :  { %v720_v63 = vpop.f32.mrf.mxu3 }
 0x459   :  { %v721_v0 = vadd.f32 %v1562_v25, %v720_v63  ;;  %v952_v63 = vld [vmem:[%s1688_s6 + $0x28] sm:$0xff] }
 0x45b   :  { %v786_v29 = vadd.f32 %v785_v24, %v721_v0  ;;  %v955_v24 = vld [vmem:[%s1688_s6 + $0x40] sm:$0xff] }
 0x45c   :  { %974 = vmatpush.msra.mxu2 %v955_v24  ;;  %v951_v0 = vld [vmem:[%s1688_s6 + $0x20] sm:$0xff] }
 0x45d   :  { %v831_v28 = vmax.f32 %v786_v29, 0.0  ;;  %v950_v29 = vld [vmem:[%s1688_s6 + $0x18] sm:$0xff] }
 0x45e   :  { %975 = vmatpush.msra.mxu2 %v954_v27 }
 0x45f   :  { %885 = vmatmul.f32.gmra.mxu1 %v831_v28 }
 0x460   :  { %v723_v7 = vpop.f32.mrf.mxu3 }
 0x461   :  { %v724_v19 = vadd.f32 %v1562_v25, %v723_v7 }
 0x463   :  { %v789_v1 = vadd.f32 %v788_v26, %v724_v19  ;;  %v949_v19 = vld [vmem:[%s1688_s6 + $0x10] sm:$0xff] }
 0x465   :  { %v832_v23 = vmax.f32 %v789_v1, 0.0 }
 0x467   :  { %888 = vmatmul.f32.gmra.mxu1 %v832_v23  ;;  %v948_v23 = vld [vmem:[%s1688_s6 + $0x8] sm:$0xff] }
 0x468   :  { %v726_v31 = vpop.f32.mrf.mxu3 }
 0x469   :  { %v727_v32 = vadd.f32 %v1562_v25, %v726_v31  ;;  %v947_v31 = vld [vmem:[%s1688_s6] sm:$0xff] }
 0x46b   :  { %v792_v44 = vadd.f32 %v791_v4, %v727_v32  ;;  %v953_v4 = vld [vmem:[%s1688_s6 + $0x30] sm:$0xff] }
 0x46c   :  { %976 = vmatpush.msra.mxu2 %v953_v4 }
 0x46d   :  { %v833_v33 = vmax.f32 %v792_v44, 0.0 }
 0x46e   :  { %977 = vmatpush.msra.mxu2 %v952_v63 }
 0x46f   :  { %891 = vmatmul.f32.gmra.mxu1 %v833_v33 }
 0x470   :  { %v729_v36 = vpop.f32.mrf.mxu3  ;;  %978 = vmatpush.msra.mxu2 %v951_v0 }
 0x471   :  { %v730_v37 = vadd.f32 %v1562_v25, %v729_v36 }
 0x472   :  { %979 = vmatpush.msra.mxu2 %v950_v29 }
 0x473   :  { %v795_v22 = vadd.f32 %v794_v21, %v730_v37 }
 0x474   :  { %980 = vmatpush.msra.mxu2 %v949_v19 }
 0x475   :  { %v834_v38 = vmax.f32 %v795_v22, 0.0 }
 0x476   :  { %981 = vmatpush.msra.mxu2 %v948_v23 }
 0x477   :  { %894 = vmatmul.f32.gmra.mxu1 %v834_v38 }
 0x478   :  { %v732_v39 = vpop.f32.mrf.mxu3  ;;  %982 = vmatpush.msra.mxu2 %v947_v31  ;;  %v1142_v31 = vld [vmem:[%s1689_s7] ss:$0 sm:$0xff] }
 0x479   :  { %v733_v40 = vadd.f32 %v1562_v25, %v732_v39 }
 0x47b   :  { %v798_v34 = vadd.f32 %v797_v30, %v733_v40  ;;  %v821_v30 = vpop.f32.mrf.mxu0 }
 0x47d   :  { %v835_v43 = vmax.f32 %v798_v34, 0.0 }
 0x47f   :  { %897 = vmatmul.f32.gmra.mxu1 %v835_v43 }
 0x480   :  { %v735_v47 = vpop.f32.mrf.mxu3 }
 0x481   :  { %v736_v41 = vadd.f32 %v1562_v25, %v735_v47  ;;  %v1141_v47 = vld [vmem:[%s1687_s5] ss:$0 sm:$0xff] }
 0x483   :  { %v801_v48 = vadd.f32 %v800_v35, %v736_v41  ;;  %v824_v36 = vpop.f32.mrf.mxu0 }
 0x485   :  { %v836_v52 = vmax.f32 %v801_v48, 0.0 }
 0x487   :  { %900 = vmatmul.f32.gmra.mxu1 %v836_v52 }
 0x488   :  { %v738_v60 = vpop.f32.mrf.mxu3 }
 0x489   :  { %v739_v46 = vadd.f32 %v1562_v25, %v738_v60 }
 0x48b   :  { %v804_v54 = vadd.f32 %v803_v42, %v739_v46  ;;  %v827_v34 = vpop.f32.mrf.mxu0 }
 0x48d   :  { %v837_v55 = vmax.f32 %v804_v54, 0.0 }
 0x48f   :  { %903 = vmatmul.f32.gmra.mxu1 %v837_v55 }
 0x490   :  { %v741_v59 = vpop.f32.mrf.mxu3 }
 0x491   :  { %v742_v61 = vadd.f32 %v1562_v25, %v741_v59 }
 0x493   :  { %v807_v50 = vadd.f32 %v806_v49, %v742_v61 }
 0x495   :  { %v838_v62 = vmax.f32 %v807_v50, 0.0 }
 0x497   :  { %906 = vmatmul.f32.gmra.mxu1 %v838_v62 }
 0x498   :  { %v744_v13 = vpop.f32.mrf.mxu3 }
 0x499   :  { %v745_v14 = vadd.f32 %v1562_v25, %v744_v13 }
 0x49b   :  { %v810_v15 = vadd.f32 %v809_v58, %v745_v14 }
 0x49d   :  { %v839_v6 = vmax.f32 %v810_v15, 0.0 }
 0x49f   :  { %909 = vmatmul.f32.gmra.mxu1 %v839_v6 }
 0x4a0   :  { %v747_v51 = vpop.f32.mrf.mxu3 }
 0x4a1   :  { %v748_v9 = vadd.f32 %v1562_v25, %v747_v51 }
 0x4a3   :  { %v813_v56 = vadd.f32 %v812_v12, %v748_v9 }
 0x4a5   :  { %v840_v2 = vmax.f32 %v813_v56, 0.0 }
 0x4a7   :  { %912 = vmatmul.f32.gmra.mxu1 %v840_v2 }
 0x4a8   :  { %v750_v16 = vpop.f32.mrf.mxu3 }
 0x4a9   :  { %v751_v26 = vadd.f32 %v1562_v25, %v750_v16 }
 0x4ab   :  { %v816_v17 = vadd.f32 %v815_v10, %v751_v26 }
 0x4ad   :  { %v841_v18 = vmax.f32 %v816_v17, 0.0 }
 0x4af   :  { %915 = vmatmul.f32.gmra.mxu1 %v841_v18 }
 0x4b0   :  { %v753_v21 = vpop.f32.mrf.mxu3 }
 0x4b1   :  { %v754_v28 = vadd.f32 %v1562_v25, %v753_v21 }
 0x4b3   :  { %v819_v7 = vadd.f32 %v818_v20, %v754_v28 }
 0x4b5   :  { %v842_v1 = vmax.f32 %v819_v7, 0.0 }
 0x4b7   :  { %918 = vmatmul.f32.gmra.mxu1 %v842_v1 }
 0x4b8   :  { %v756_v32 = vpop.f32.mrf.mxu3 }
 0x4b9   :  { %v757_v44 = vadd.f32 %v1562_v25, %v756_v32 }
 0x4bb   :  { %v822_v33 = vadd.f32 %v821_v30, %v757_v44 }
 0x4bd   :  { %v843_v35 = vmax.f32 %v822_v33, 0.0 }
 0x4bf   :  { %921 = vmatmul.f32.gmra.mxu1 %v843_v35 }
 0x4c0   :  { %v759_v37 = vpop.f32.mrf.mxu3 }
 0x4c1   :  { %v760_v22 = vadd.f32 %v1562_v25, %v759_v37 }
 0x4c3   :  { %v825_v38 = vadd.f32 %v824_v36, %v760_v22 }
 0x4c5   :  { %v844_v39 = vmax.f32 %v825_v38, 0.0 }
 0x4c7   :  { %924 = vmatmul.f32.gmra.mxu1 %v844_v39 }
 0x4c8   :  { %v762_v40 = vpop.f32.mrf.mxu3 }
 0x4c9   :  { %v763_v42 = vadd.f32 %v1562_v25, %v762_v40 }
 0x4cb   :  { %v828_v43 = vadd.f32 %v827_v34, %v763_v42 }
 0x4cd   :  { %v845_v45 = vmax.f32 %v828_v43, 0.0 }
 0x4cf   :  { %927 = vmatmul.f32.gmra.mxu1 %v845_v45 }
 0x4d4   :  { %v883_v41 = vpop.f32.mrf.mxu1 }
 0x4d5   :  { %v884_v48 = vadd.f32 %v1141_v47, %v883_v41 }
 0x4d7   :  { %v931_v49 = vmax.f32 %v884_v48, 0.0 }
 0x4d9   :  { %983 = vmatmul.f32.vlgmr.msra.gmra.mxu2 %v931_v49 }
 0x4dc   :  { %v886_v52 = vpop.f32.mrf.mxu1 }
 0x4dd   :  { %v887_v53 = vadd.f32 %v1141_v47, %v886_v52 }
 0x4df   :  { %v932_v60 = vmax.f32 %v887_v53, 0.0 }
 0x4e1   :  { %986 = vmatmul.f32.gmra.mxu2 %v932_v60 }
 0x4e4   :  { %v889_v46 = vpop.f32.mrf.mxu1 }
 0x4e5   :  { %v890_v54 = vadd.f32 %v1141_v47, %v889_v46 }
 0x4e7   :  { %v933_v55 = vmax.f32 %v890_v54, 0.0 }
 0x4e9   :  { %989 = vmatmul.f32.gmra.mxu2 %v933_v55 }
 0x4ec   :  { %v892_v25 = vpop.f32.mrf.mxu1 }
 0x4ed   :  { %v893_v57 = vadd.f32 %v1141_v47, %v892_v25 }
 0x4ef   :  { %v934_v58 = vmax.f32 %v893_v57, 0.0 }
 0x4f1   :  { %992 = vmatmul.f32.gmra.mxu2 %v934_v58 }
 0x4f4   :  { %v895_v59 = vpop.f32.mrf.mxu1 }
 0x4f5   :  { %v896_v61 = vadd.f32 %v1141_v47, %v895_v59 }
 0x4f7   :  { %v935_v50 = vmax.f32 %v896_v61, 0.0 }
 0x4f9   :  { %995 = vmatmul.f32.gmra.mxu2 %v935_v50 }
 0x4fc   :  { %v898_v62 = vpop.f32.mrf.mxu1 }
 0x4fd   :  { %v899_v5 = vadd.f32 %v1141_v47, %v898_v62 }
 0x4ff   :  { %v936_v12 = vmax.f32 %v899_v5, 0.0 }
 0x501   :  { %998 = vmatmul.f32.gmra.mxu2 %v936_v12 }
 0x504   :  { %v901_v13 = vpop.f32.mrf.mxu1 }
 0x505   :  { %v902_v14 = vadd.f32 %v1141_v47, %v901_v13 }
 0x507   :  { %v937_v15 = vmax.f32 %v902_v14, 0.0 }
 0x509   :  { %1001 = vmatmul.f32.gmra.mxu2 %v937_v15 }
 0x50c   :  { %v904_v6 = vpop.f32.mrf.mxu1 }
 0x50d   :  { %v905_v11 = vadd.f32 %v1141_v47, %v904_v6 }
 0x50f   :  { %v938_v51 = vmax.f32 %v905_v11, 0.0 }
 0x511   :  { %1004 = vmatmul.f32.gmra.mxu2 %v938_v51 }
 0x514   :  { %v907_v9 = vpop.f32.mrf.mxu1 }
 0x515   :  { %v908_v10 = vadd.f32 %v1141_v47, %v907_v9 }
 0x517   :  { %v939_v56 = vmax.f32 %v908_v10, 0.0 }
 0x519   :  { %1007 = vmatmul.f32.gmra.mxu2 %v939_v56 }
 0x51c   :  { %v910_v3 = vpop.f32.mrf.mxu1 }
 0x51d   :  { %v911_v2 = vadd.f32 %v1141_v47, %v910_v3 }
 0x51f   :  { %v940_v8 = vmax.f32 %v911_v2, 0.0 }
 0x521   :  { %1010 = vmatmul.f32.gmra.mxu2 %v940_v8 }
 0x524   :  { %v913_v24 = vpop.f32.mrf.mxu1 }
 0x525   :  { %v914_v16 = vadd.f32 %v1141_v47, %v913_v24 }
 0x527   :  { %v941_v26 = vmax.f32 %v914_v16, 0.0 }
 0x529   :  { %1013 = vmatmul.f32.gmra.mxu2 %v941_v26 }
 0x52c   :  { %v916_v27 = vpop.f32.mrf.mxu1 }
 0x52d   :  { %v917_v17 = vadd.f32 %v1141_v47, %v916_v27 }
 0x52f   :  { %v942_v4 = vmax.f32 %v917_v17, 0.0 }
 0x531   :  { %1016 = vmatmul.f32.gmra.mxu2 %v942_v4 }
 0x534   :  { %v919_v20 = vpop.f32.mrf.mxu1 }
 0x535   :  { %v920_v18 = vadd.f32 %v1141_v47, %v919_v20 }
 0x537   :  { %v943_v63 = vmax.f32 %v920_v18, 0.0 }
 0x539   :  { %1019 = vmatmul.f32.gmra.mxu2 %v943_v63 }
 0x53c   :  { %v922_v0 = vpop.f32.mrf.mxu1 }
 0x53d   :  { %v923_v29 = vadd.f32 %v1141_v47, %v922_v0 }
 0x53f   :  { %v944_v21 = vmax.f32 %v923_v29, 0.0 }
 0x541   :  { %1022 = vmatmul.f32.gmra.mxu2 %v944_v21 }
 0x544   :  { %v925_v28 = vpop.f32.mrf.mxu1 }
 0x545   :  { %v926_v7 = vadd.f32 %v1141_v47, %v925_v28 }
 0x547   :  { %v945_v19 = vmax.f32 %v926_v7, 0.0 }
 0x549   :  { %1025 = vmatmul.f32.gmra.mxu2 %v945_v19 }
 0x54c   :  { %v928_v1 = vpop.f32.mrf.mxu1 }
 0x54d   :  { %v929_v23 = vadd.f32 %v1141_v47, %v928_v1 }
 0x54f   :  { %v946_v30 = vmax.f32 %v929_v23, 0.0 }
 0x551   :  { %1028 = vmatmul.f32.gmra.mxu2 %v946_v30 }
 0x55c   :  { %v984_v32 = vpop.f32.mrf.mxu2 }
 0x55d   :  { %v985_v44 = vadd.f32 %v1142_v31, %v984_v32 }
 0x55f   :  { %1032 = vst [vmem:[%s1690_s8] sm:$0xff] %v985_v44 }
 0x564   :  { %v987_v33 = vpop.f32.mrf.mxu2 }
 0x565   :  { %v988_v35 = vadd.f32 %v1142_v31, %v987_v33 }
 0x567   :  { %1033 = vst [vmem:[%s1690_s8 + $0x8] sm:$0xff] %v988_v35 }
 0x56c   :  { %v990_v36 = vpop.f32.mrf.mxu2 }
 0x56d   :  { %v991_v37 = vadd.f32 %v1142_v31, %v990_v36 }
 0x56f   :  { %1034 = vst [vmem:[%s1690_s8 + $0x10] sm:$0xff] %v991_v37 }
 0x574   :  { %v993_v22 = vpop.f32.mrf.mxu2 }
 0x575   :  { %v994_v38 = vadd.f32 %v1142_v31, %v993_v22 }
 0x577   :  { %1035 = vst [vmem:[%s1690_s8 + $0x18] sm:$0xff] %v994_v38 }
 0x57c   :  { %v996_v39 = vpop.f32.mrf.mxu2 }
 0x57d   :  { %v997_v40 = vadd.f32 %v1142_v31, %v996_v39 }
 0x57f   :  { %1036 = vst [vmem:[%s1690_s8 + $0x20] sm:$0xff] %v997_v40 }
 0x584   :  { %v999_v42 = vpop.f32.mrf.mxu2 }
 0x585   :  { %v1000_v34 = vadd.f32 %v1142_v31, %v999_v42 }
 0x587   :  { %1037 = vst [vmem:[%s1690_s8 + $0x28] sm:$0xff] %v1000_v34 }
 0x58c   :  { %v1002_v43 = vpop.f32.mrf.mxu2 }
 0x58d   :  { %v1003_v45 = vadd.f32 %v1142_v31, %v1002_v43 }
 0x58f   :  { %1038 = vst [vmem:[%s1690_s8 + $0x30] sm:$0xff] %v1003_v45 }
 0x594   :  { %v1005_v47 = vpop.f32.mrf.mxu2 }
 0x595   :  { %v1006_v41 = vadd.f32 %v1142_v31, %v1005_v47 }
 0x597   :  { %1039 = vst [vmem:[%s1690_s8 + $0x38] sm:$0xff] %v1006_v41 }
 0x59c   :  { %v1008_v48 = vpop.f32.mrf.mxu2 }
 0x59d   :  { %v1009_v49 = vadd.f32 %v1142_v31, %v1008_v48 }
 0x59f   :  { %1040 = vst [vmem:[%s1690_s8 + $0x40] sm:$0xff] %v1009_v49 }
 0x5a4   :  { %v1011_v52 = vpop.f32.mrf.mxu2 }
 0x5a5   :  { %v1012_v53 = vadd.f32 %v1142_v31, %v1011_v52 }
 0x5a7   :  { %1041 = vst [vmem:[%s1690_s8 + $0x48] sm:$0xff] %v1012_v53 }
 0x5ac   :  { %v1014_v60 = vpop.f32.mrf.mxu2 }
 0x5ad   :  { %v1015_v46 = vadd.f32 %v1142_v31, %v1014_v60 }
 0x5af   :  { %1042 = vst [vmem:[%s1690_s8 + $0x50] sm:$0xff] %v1015_v46 }
 0x5b4   :  { %v1017_v54 = vpop.f32.mrf.mxu2 }
 0x5b5   :  { %v1018_v55 = vadd.f32 %v1142_v31, %v1017_v54 }
 0x5b7   :  { %1043 = vst [vmem:[%s1690_s8 + $0x58] sm:$0xff] %v1018_v55 }
 0x5bc   :  { %v1020_v25 = vpop.f32.mrf.mxu2 }
 0x5bd   :  { %v1021_v57 = vadd.f32 %v1142_v31, %v1020_v25 }
 0x5bf   :  { %1044 = vst [vmem:[%s1690_s8 + $0x60] sm:$0xff] %v1021_v57 }
 0x5c4   :  { %v1023_v58 = vpop.f32.mrf.mxu2 }
 0x5c5   :  { %v1024_v59 = vadd.f32 %v1142_v31, %v1023_v58 }
 0x5c7   :  { %1045 = vst [vmem:[%s1690_s8 + $0x68] sm:$0xff] %v1024_v59 }
 0x5cc   :  { %v1026_v61 = vpop.f32.mrf.mxu2 }
 0x5cd   :  { %v1027_v50 = vadd.f32 %v1142_v31, %v1026_v61 }
 0x5cf   :  { %1046 = vst [vmem:[%s1690_s8 + $0x70] sm:$0xff] %v1027_v50 }
 0x5d4   :  { %v1029_v62 = vpop.f32.mrf.mxu2 }
 0x5d5   :  { %v1030_v5 = vadd.f32 %v1142_v31, %v1029_v62 }
 0x5d7   :  { %1047 = vst [vmem:[%s1690_s8 + $0x78] sm:$0xff] %v1030_v5 }
 0x5d8   :  { %1052 = vsyncpa [#allocation3], 1 }

</bundles_post_ra>
